<compile_context>
chip_gen: v6e
topology: v6e:2x2x1
jax: 0.10.0
libtpu: 0.0.40
codegen_flags: <defaults>
</compile_context>

<pallas_src>
import numpy as np
import jax
import jax.numpy as jnp
from jax.experimental import pallas as pl
from jax.experimental.pallas import tpu as pltpu

EPS = 1e-5
P1, P2, KW = 10, 4, 3          # MaxPool1d(10), MaxPool1d(4), conv kernel width
C1, C2, NCLS = 5, 3, 3         # conv1 out-channels, conv2 out-channels, classes
VMEM_SPEC = pl.BlockSpec(memory_space=pltpu.MemorySpace.VMEM)


# ---------------------------------------------------------------------------
# Fused kernel: conv1+ReLU+BN1+pool1 + conv2+ReLU+BN2+pool2 + FC + log_softmax
# ---------------------------------------------------------------------------
def _clf_kernel(xs_ref, pp_ref, wfc_ref, out_ref):
    # xs : (M=12, LN)          unfolded input, xs[m, b*NP + p] = x_pad[b, P1*p + m]
    # pp : (8, 64)             packed per-channel parameters (see prepare_params)
    # wfc: (C2, B, NCLS, LN)   FC weight expanded/masked to the stage-2 lane layout
    # out: (B, NCLS)           log-probabilities
    LN = xs_ref.shape[1]
    B = out_ref.shape[0]
    NP = LN // B                       # pooled-1 positions per batch row (300)
    f32 = jnp.float32

    # Hoisted per-channel constants: broadcast each conv1 tap + bias exactly ONCE.
    w1f = [jnp.broadcast_to(pp_ref[0:C1, t:t + 1], (C1, LN)) for t in range(KW)]
    b1f = jnp.broadcast_to(pp_ref[0:C1, 3:4], (C1, LN))

    # ---- Stage 1: Conv1d(1->5, k=3, p=1) + ReLU over the P1 pool-window offsets. ------
    # Running sum/sumsq (for BN1 batch stats) and max/min (for the fused BN1+pool1).
    # NOTE: a stride-0 sublane-broadcast load (pl.ds(k, C1, stride=0)) would also move the
    # row replication onto the vld slots; the plain row load + mul-broadcast is kept for
    # portability, the hot ops are the 10x(5,600) multiply/accumulate chains below.
    s1 = jnp.zeros((C1, LN), f32)
    q1 = jnp.zeros((C1, LN), f32)
    mx1 = None
    mn1 = None
    for k in range(P1):
        y = xs_ref[k] * w1f[0] + b1f
        y = y + xs_ref[k + 1] * w1f[1]
        y = y + xs_ref[k + 2] * w1f[2]
        y = jnp.maximum(y, 0.0)                       # ReLU (before BN, as in the module)
        s1 = s1 + y
        q1 = q1 + y * y
        mx1 = y if mx1 is None else jnp.maximum(mx1, y)
        mn1 = y if mn1 is None else jnp.minimum(mn1, y)

    # BN1 batch statistics (biased variance, clamped against f32 cancellation), then
    # BN1 + MaxPool1d(10) fused exactly:  max_k(a*y_k + s) = max(a*max_k y, a*min_k y) + s
    n1 = float(P1 * LN)                                # per-channel element count = B*L
    mean1 = jnp.sum(s1, axis=1, keepdims=True) * (1.0 / n1)
    var1 = jnp.maximum(jnp.sum(q1, axis=1, keepdims=True) * (1.0 / n1) - mean1 * mean1, 0.0)
    scale1 = pp_ref[0:C1, 4:5] * jax.lax.rsqrt(var1 + EPS)
    shift1 = pp_ref[0:C1, 5:6] - mean1 * scale1
    pooled1 = jnp.maximum(scale1 * mx1, scale1 * mn1) + shift1              # (C1, LN)

    # ---- Conv2 neighbours (zero padding=1): lane shifts + per-batch-block boundary mask.
    lane = jax.lax.broadcasted_iota(jnp.int32, (1, LN), 1)
    first = lane == 0
    last = lane == NP - 1
    for b in range(1, B):
        first = jnp.logical_or(first, lane == b * NP)
        last = jnp.logical_or(last, lane == (b + 1) * NP - 1)
    zc = jnp.zeros((C1, 1), f32)
    left = jnp.where(first, 0.0, jnp.concatenate([zc, pooled1[:, :LN - 1]], axis=1))
    right = jnp.where(last, 0.0, jnp.concatenate([pooled1[:, 1:], zc], axis=1))

    # ---- Stage 2: Conv1d(5->3, k=3, p=1) + ReLU: multiply + sublane reduce per output
    #      channel (exact f32; contraction size 15 is too small for an MXU pass). --------
    srcs = (left, pooled1, right)                      # taps t = 0,1,2  (p-1, p, p+1)
    rows = []
    for o in range(C2):
        acc = None
        for t in range(KW):
            c0 = 16 + t * C2 + o
            term = srcs[t] * pp_ref[0:C1, c0:c0 + 1]
            acc = term if acc is None else acc + term
        rows.append(jnp.sum(acc, axis=0, keepdims=True))                    # (1, LN)
    y2 = jnp.concatenate(rows, axis=0) + pp_ref[0:C2, 8:9]                  # (C2, LN)
    y2 = jnp.maximum(y2, 0.0)

    # BN2 on the full (un-pooled) tensor -- every position is present in this layout.
    n2 = float(LN)
    mean2 = jnp.sum(y2, axis=1, keepdims=True) * (1.0 / n2)
    var2 = jnp.maximum(jnp.sum(y2 * y2, axis=1, keepdims=True) * (1.0 / n2) - mean2 * mean2, 0.0)
    scale2 = pp_ref[0:C2, 6:7] * jax.lax.rsqrt(var2 + EPS)
    shift2 = pp_ref[0:C2, 7:8] - mean2 * scale2
    y2 = y2 * scale2 + shift2

    # ---- MaxPool1d(4): windows are 4 consecutive lanes (p = 4*v + j); two shift+max
    #      steps give the window max at every j==0 lane (other lanes are masked off by the
    #      zero FC weights, and their windows never reach the zero fill -> exact). --------
    sh1 = jnp.concatenate([y2[:, 1:], jnp.zeros((C2, 1), f32)], axis=1)
    m1 = jnp.maximum(y2, sh1)
    sh2 = jnp.concatenate([m1[:, 2:], jnp.zeros((C2, 2), f32)], axis=1)
    gmax = jnp.maximum(m1, sh2)        # gmax[:, b*NP + 4*v] == pooled2[b, :, v]

    # ---- FC (225 -> 3) as a lane-dense masked contraction + log_softmax ---------------
    logits = jnp.broadcast_to(pp_ref[0:1, 9:9 + NCLS], (B, NCLS))
    for c in range(C2):
        logits = logits + jnp.sum(wfc_ref[c] * gmax[c][None, None, :], axis=-1)
    mx = jnp.max(logits, axis=-1, keepdims=True)
    z = logits - mx
    lse = jnp.log(jnp.sum(jnp.exp(z), axis=-1, keepdims=True))
    out_ref[...] = z - lse


# ---------------------------------------------------------------------------
# Call-invariant parameter re-layout (run ONCE, outside the per-call path)
# ---------------------------------------------------------------------------
def prepare_params(p, batch):
    f32 = jnp.float32
    V = 225 // C2                  # 75 pooled-2 positions per channel
    NP = P2 * V                    # 300 pooled-1 positions per batch row

    pp = jnp.zeros((8, 64), f32)
    w1 = p["conv1_w"].astype(f32)                                   # (5, 1, 3)
    pp = pp.at[0:C1, 0:KW].set(w1[:, 0, :])                         # cols 0..2: conv1 taps
    pp = pp.at[0:C1, 3].set(p["conv1_b"].astype(f32))
    pp = pp.at[0:C1, 4].set(p["bn1_g"].astype(f32))
    pp = pp.at[0:C1, 5].set(p["bn1_b"].astype(f32))
    pp = pp.at[0:C2, 6].set(p["bn2_g"].astype(f32))
    pp = pp.at[0:C2, 7].set(p["bn2_b"].astype(f32))
    pp = pp.at[0:C2, 8].set(p["conv2_b"].astype(f32))
    pp = pp.at[0, 9:9 + NCLS].set(p["fc_b"].astype(f32))
    w2 = p["conv2_w"].astype(f32)                                   # (o, c, t) = (3, 5, 3)
    # column 16 + t*C2 + o holds conv2_w[o, :, t]
    pp = pp.at[0:C1, 16:16 + KW * C2].set(jnp.transpose(w2, (1, 2, 0)).reshape(C1, KW * C2))

    # FC weight expanded to the stage-2 lane layout (lane = b*NP + 4*v + j); nonzero only
    # at j == 0 lanes of the owning batch block.  torch flatten order: feature = c*V + v.
    wfc = p["fc_w"].astype(f32).reshape(NCLS, C2, V)                # (cls, c, v)
    blk = jnp.zeros((C2, NCLS, V, P2), f32).at[:, :, :, 0].set(jnp.transpose(wfc, (1, 0, 2)))
    blk = blk.reshape(C2, NCLS, NP)
    wfc_exp = jnp.zeros((C2, batch, NCLS, batch * NP), f32)
    for b in range(batch):
        wfc_exp = wfc_exp.at[:, b, :, b * NP:(b + 1) * NP].set(blk)
    return {"pp": pp, "wfc": wfc_exp}


# ---------------------------------------------------------------------------
# Per-call wrapper: unfold the input with static reshapes/slices, one pallas_call
# ---------------------------------------------------------------------------
def clf_forward(x, kp):
    x = x.astype(jnp.float32)
    B, L = x.shape
    assert L % (P1 * P2) == 0
    NP = L // P1                                 # 300
    M = P1 + KW - 1                              # 12 unfold rows
    # xs[m, b*NP + p] = x_pad[b, P1*p + m]  (conv1 zero padding folded in, no gather HLO)
    xp = jnp.pad(x, ((0, 0), (1, 1)))
    a0 = xp[:, 0:L].reshape(B, NP, P1)                                       # m = 0..P1-1
    a1 = xp[:, KW - 1:L + KW - 1].reshape(B, NP, P1)[:, :, P1 - (KW - 1):]   # m = P1..M-1
    xs = jnp.transpose(jnp.concatenate([a0, a1], axis=2), (2, 0, 1)).reshape(M, B * NP)

    return pl.pallas_call(
        _clf_kernel,
        out_shape=jax.ShapeDtypeStruct((B, NCLS), jnp.float32),
        in_specs=[VMEM_SPEC, VMEM_SPEC, VMEM_SPEC],
        out_specs=VMEM_SPEC,
    )(xs, kp["pp"], kp["wfc"])


# ---------------------------------------------------------------------------
# Pure-JAX reference (independent code path) for correctness check
# ---------------------------------------------------------------------------
def ref_forward(x, p):
    hi = jax.lax.Precision.HIGHEST
    xr = x[:, None, :].astype(jnp.float32)
    y = jax.lax.conv_general_dilated(
        xr, p["conv1_w"], (1,), ((1, 1),),
        dimension_numbers=("NCH", "OIH", "NCH"), precision=hi) + p["conv1_b"][None, :, None]
    y = jnp.maximum(y, 0.0)
    mean = y.mean(axis=(0, 2), keepdims=True)
    var = ((y - mean) ** 2).mean(axis=(0, 2), keepdims=True)
    y = (y - mean) / jnp.sqrt(var + EPS) * p["bn1_g"][None, :, None] + p["bn1_b"][None, :, None]
    B, C, L = y.shape
    y = y[:, :, :(L // 10) * 10].reshape(B, C, L // 10, 10).max(-1)
    y = jax.lax.conv_general_dilated(
        y, p["conv2_w"], (1,), ((1, 1),),
        dimension_numbers=("NCH", "OIH", "NCH"), precision=hi) + p["conv2_b"][None, :, None]
    y = jnp.maximum(y, 0.0)
    mean = y.mean(axis=(0, 2), keepdims=True)
    var = ((y - mean) ** 2).mean(axis=(0, 2), keepdims=True)
    y = (y - mean) / jnp.sqrt(var + EPS) * p["bn2_g"][None, :, None] + p["bn2_b"][None, :, None]
    B, C, L = y.shape
    y = y[:, :, :(L // 4) * 4].reshape(B, C, L // 4, 4).max(-1)
    feat = y.reshape(B, -1)
    logits = jnp.dot(feat, p["fc_w"].T, precision=hi) + p["fc_b"]
    return jax.nn.log_softmax(logits, axis=1)


def init_params(key):
    ks = jax.random.split(key, 10)

    def u(k, shape, bound):
        return jax.random.uniform(k, shape, jnp.float32, -bound, bound)

    return {
        "conv1_w": u(ks[0], (5, 1, 3), 1.0 / np.sqrt(1 * 3)),
        "conv1_b": u(ks[1], (5,), 1.0 / np.sqrt(1 * 3)),
        "bn1_g": jnp.ones((5,), jnp.float32) + 0.1 * u(ks[2], (5,), 1.0),
        "bn1_b": 0.1 * u(ks[3], (5,), 1.0),
        "conv2_w": u(ks[4], (3, 5, 3), 1.0 / np.sqrt(5 * 3)),
        "conv2_b": u(ks[5], (3,), 1.0 / np.sqrt(5 * 3)),
        "bn2_g": jnp.ones((3,), jnp.float32) + 0.1 * u(ks[6], (3,), 1.0),
        "bn2_b": 0.1 * u(ks[7], (3,), 1.0),
        "fc_w": u(ks[8], (3, 225), 1.0 / np.sqrt(225)),
        "fc_b": u(ks[9], (3,), 1.0 / np.sqrt(225)),
    }


if __name__ == "__main__":
    key = jax.random.PRNGKey(0)
    pkey, xkey = jax.random.split(key)
    params = init_params(pkey)

    # fc expects 225 features = 3 * ((L // 10) // 4)  =>  L = 3000
    B, L = 2, 3000
    x = jax.random.normal(xkey, (B, L), jnp.float32)

    kparams = prepare_params(params, B)          # call-invariant prep, done once
    fwd = jax.jit(clf_forward)
    out = jax.block_until_ready(fwd(x, kparams))

    ref = ref_forward(x, params)
    np.testing.assert_allclose(np.asarray(out), np.asarray(ref), atol=1e-3, rtol=1e-3)

    print("KERNEL_OK")
</pallas_src>

<mosaic_0001>
module attributes {stable_mosaic.version = 11 : i64} {
  func.func @_clf_kernel(%arg0: memref<12x600xf32, #tpu.memory_space<vmem>>, %arg1: memref<8x64xf32, #tpu.memory_space<vmem>>, %arg2: memref<3x2x3x600xf32, #tpu.memory_space<vmem>>, %arg3: memref<2x3xf32, #tpu.memory_space<vmem>>) attributes {dimension_semantics = [], scalar_prefetch = 0 : i64, scratch_operands = 0 : i64, tpu.core_type = #tpu.core_type<tc>} {
    %c0 = arith.constant 0 : index
    %c0_0 = arith.constant 0 : index
    %0 = vector.load %arg1[%c0, %c0_0] : memref<8x64xf32, #tpu.memory_space<vmem>>, vector<5x1xf32>
    %1 = vector.shape_cast %0 : vector<5x1xf32> to vector<5x1xf32>
    %2 = vector.broadcast %1 : vector<5x1xf32> to vector<5x600xf32>
    %c0_1 = arith.constant 0 : index
    %c1 = arith.constant 1 : index
    %3 = vector.load %arg1[%c0_1, %c1] : memref<8x64xf32, #tpu.memory_space<vmem>>, vector<5x1xf32>
    %4 = vector.shape_cast %3 : vector<5x1xf32> to vector<5x1xf32>
    %5 = vector.broadcast %4 : vector<5x1xf32> to vector<5x600xf32>
    %c0_2 = arith.constant 0 : index
    %c2 = arith.constant 2 : index
    %6 = vector.load %arg1[%c0_2, %c2] : memref<8x64xf32, #tpu.memory_space<vmem>>, vector<5x1xf32>
    %7 = vector.shape_cast %6 : vector<5x1xf32> to vector<5x1xf32>
    %8 = vector.broadcast %7 : vector<5x1xf32> to vector<5x600xf32>
    %c0_3 = arith.constant 0 : index
    %c3 = arith.constant 3 : index
    %9 = vector.load %arg1[%c0_3, %c3] : memref<8x64xf32, #tpu.memory_space<vmem>>, vector<5x1xf32>
    %10 = vector.shape_cast %9 : vector<5x1xf32> to vector<5x1xf32>
    %11 = vector.broadcast %10 : vector<5x1xf32> to vector<5x600xf32>
    %cst = arith.constant 0.000000e+00 : f32
    %12 = vector.broadcast %cst : f32 to vector<5x600xf32>
    %cst_4 = arith.constant 0.000000e+00 : f32
    %13 = vector.broadcast %cst_4 : f32 to vector<5x600xf32>
    %c0_5 = arith.constant 0 : index
    %c0_6 = arith.constant 0 : index
    %14 = vector.load %arg0[%c0_5, %c0_6] : memref<12x600xf32, #tpu.memory_space<vmem>>, vector<1x600xf32>
    %15 = vector.shape_cast %14 : vector<1x600xf32> to vector<600xf32>
    %16 = vector.shape_cast %15 : vector<600xf32> to vector<1x600xf32>
    %17 = vector.broadcast %16 : vector<1x600xf32> to vector<5x600xf32>
    %18 = arith.mulf %17, %2 : vector<5x600xf32>
    %19 = arith.addf %18, %11 : vector<5x600xf32>
    %c1_7 = arith.constant 1 : index
    %c0_8 = arith.constant 0 : index
    %20 = vector.load %arg0[%c1_7, %c0_8] : memref<12x600xf32, #tpu.memory_space<vmem>>, vector<1x600xf32>
    %21 = vector.shape_cast %20 : vector<1x600xf32> to vector<600xf32>
    %22 = vector.shape_cast %21 : vector<600xf32> to vector<1x600xf32>
    %23 = vector.broadcast %22 : vector<1x600xf32> to vector<5x600xf32>
    %24 = arith.mulf %23, %5 : vector<5x600xf32>
    %25 = arith.addf %19, %24 : vector<5x600xf32>
    %c2_9 = arith.constant 2 : index
    %c0_10 = arith.constant 0 : index
    %26 = vector.load %arg0[%c2_9, %c0_10] : memref<12x600xf32, #tpu.memory_space<vmem>>, vector<1x600xf32>
    %27 = vector.shape_cast %26 : vector<1x600xf32> to vector<600xf32>
    %28 = vector.shape_cast %27 : vector<600xf32> to vector<1x600xf32>
    %29 = vector.broadcast %28 : vector<1x600xf32> to vector<5x600xf32>
    %30 = arith.mulf %29, %8 : vector<5x600xf32>
    %31 = arith.addf %25, %30 : vector<5x600xf32>
    %cst_11 = arith.constant 0.000000e+00 : f32
    %32 = vector.broadcast %cst_11 : f32 to vector<5x600xf32>
    %33 = arith.maximumf %31, %32 : vector<5x600xf32>
    %34 = arith.addf %12, %33 : vector<5x600xf32>
    %35 = arith.mulf %33, %33 : vector<5x600xf32>
    %36 = arith.addf %13, %35 : vector<5x600xf32>
    %c1_12 = arith.constant 1 : index
    %c0_13 = arith.constant 0 : index
    %37 = vector.load %arg0[%c1_12, %c0_13] : memref<12x600xf32, #tpu.memory_space<vmem>>, vector<1x600xf32>
    %38 = vector.shape_cast %37 : vector<1x600xf32> to vector<600xf32>
    %39 = vector.shape_cast %38 : vector<600xf32> to vector<1x600xf32>
    %40 = vector.broadcast %39 : vector<1x600xf32> to vector<5x600xf32>
    %41 = arith.mulf %40, %2 : vector<5x600xf32>
    %42 = arith.addf %41, %11 : vector<5x600xf32>
    %c2_14 = arith.constant 2 : index
    %c0_15 = arith.constant 0 : index
    %43 = vector.load %arg0[%c2_14, %c0_15] : memref<12x600xf32, #tpu.memory_space<vmem>>, vector<1x600xf32>
    %44 = vector.shape_cast %43 : vector<1x600xf32> to vector<600xf32>
    %45 = vector.shape_cast %44 : vector<600xf32> to vector<1x600xf32>
    %46 = vector.broadcast %45 : vector<1x600xf32> to vector<5x600xf32>
    %47 = arith.mulf %46, %5 : vector<5x600xf32>
    %48 = arith.addf %42, %47 : vector<5x600xf32>
    %c3_16 = arith.constant 3 : index
    %c0_17 = arith.constant 0 : index
    %49 = vector.load %arg0[%c3_16, %c0_17] : memref<12x600xf32, #tpu.memory_space<vmem>>, vector<1x600xf32>
    %50 = vector.shape_cast %49 : vector<1x600xf32> to vector<600xf32>
    %51 = vector.shape_cast %50 : vector<600xf32> to vector<1x600xf32>
    %52 = vector.broadcast %51 : vector<1x600xf32> to vector<5x600xf32>
    %53 = arith.mulf %52, %8 : vector<5x600xf32>
    %54 = arith.addf %48, %53 : vector<5x600xf32>
    %cst_18 = arith.constant 0.000000e+00 : f32
    %55 = vector.broadcast %cst_18 : f32 to vector<5x600xf32>
    %56 = arith.maximumf %54, %55 : vector<5x600xf32>
    %57 = arith.addf %34, %56 : vector<5x600xf32>
    %58 = arith.mulf %56, %56 : vector<5x600xf32>
    %59 = arith.addf %36, %58 : vector<5x600xf32>
    %60 = arith.maximumf %33, %56 : vector<5x600xf32>
    %61 = arith.minimumf %33, %56 : vector<5x600xf32>
    %c2_19 = arith.constant 2 : index
    %c0_20 = arith.constant 0 : index
    %62 = vector.load %arg0[%c2_19, %c0_20] : memref<12x600xf32, #tpu.memory_space<vmem>>, vector<1x600xf32>
    %63 = vector.shape_cast %62 : vector<1x600xf32> to vector<600xf32>
    %64 = vector.shape_cast %63 : vector<600xf32> to vector<1x600xf32>
    %65 = vector.broadcast %64 : vector<1x600xf32> to vector<5x600xf32>
    %66 = arith.mulf %65, %2 : vector<5x600xf32>
    %67 = arith.addf %66, %11 : vector<5x600xf32>
    %c3_21 = arith.constant 3 : index
    %c0_22 = arith.constant 0 : index
    %68 = vector.load %arg0[%c3_21, %c0_22] : memref<12x600xf32, #tpu.memory_space<vmem>>, vector<1x600xf32>
    %69 = vector.shape_cast %68 : vector<1x600xf32> to vector<600xf32>
    %70 = vector.shape_cast %69 : vector<600xf32> to vector<1x600xf32>
    %71 = vector.broadcast %70 : vector<1x600xf32> to vector<5x600xf32>
    %72 = arith.mulf %71, %5 : vector<5x600xf32>
    %73 = arith.addf %67, %72 : vector<5x600xf32>
    %c4 = arith.constant 4 : index
    %c0_23 = arith.constant 0 : index
    %74 = vector.load %arg0[%c4, %c0_23] : memref<12x600xf32, #tpu.memory_space<vmem>>, vector<1x600xf32>
    %75 = vector.shape_cast %74 : vector<1x600xf32> to vector<600xf32>
    %76 = vector.shape_cast %75 : vector<600xf32> to vector<1x600xf32>
    %77 = vector.broadcast %76 : vector<1x600xf32> to vector<5x600xf32>
    %78 = arith.mulf %77, %8 : vector<5x600xf32>
    %79 = arith.addf %73, %78 : vector<5x600xf32>
    %cst_24 = arith.constant 0.000000e+00 : f32
    %80 = vector.broadcast %cst_24 : f32 to vector<5x600xf32>
    %81 = arith.maximumf %79, %80 : vector<5x600xf32>
    %82 = arith.addf %57, %81 : vector<5x600xf32>
    %83 = arith.mulf %81, %81 : vector<5x600xf32>
    %84 = arith.addf %59, %83 : vector<5x600xf32>
    %85 = arith.maximumf %60, %81 : vector<5x600xf32>
    %86 = arith.minimumf %61, %81 : vector<5x600xf32>
    %c3_25 = arith.constant 3 : index
    %c0_26 = arith.constant 0 : index
    %87 = vector.load %arg0[%c3_25, %c0_26] : memref<12x600xf32, #tpu.memory_space<vmem>>, vector<1x600xf32>
    %88 = vector.shape_cast %87 : vector<1x600xf32> to vector<600xf32>
    %89 = vector.shape_cast %88 : vector<600xf32> to vector<1x600xf32>
    %90 = vector.broadcast %89 : vector<1x600xf32> to vector<5x600xf32>
    %91 = arith.mulf %90, %2 : vector<5x600xf32>
    %92 = arith.addf %91, %11 : vector<5x600xf32>
    %c4_27 = arith.constant 4 : index
    %c0_28 = arith.constant 0 : index
    %93 = vector.load %arg0[%c4_27, %c0_28] : memref<12x600xf32, #tpu.memory_space<vmem>>, vector<1x600xf32>
    %94 = vector.shape_cast %93 : vector<1x600xf32> to vector<600xf32>
    %95 = vector.shape_cast %94 : vector<600xf32> to vector<1x600xf32>
    %96 = vector.broadcast %95 : vector<1x600xf32> to vector<5x600xf32>
    %97 = arith.mulf %96, %5 : vector<5x600xf32>
    %98 = arith.addf %92, %97 : vector<5x600xf32>
    %c5 = arith.constant 5 : index
    %c0_29 = arith.constant 0 : index
    %99 = vector.load %arg0[%c5, %c0_29] : memref<12x600xf32, #tpu.memory_space<vmem>>, vector<1x600xf32>
    %100 = vector.shape_cast %99 : vector<1x600xf32> to vector<600xf32>
    %101 = vector.shape_cast %100 : vector<600xf32> to vector<1x600xf32>
    %102 = vector.broadcast %101 : vector<1x600xf32> to vector<5x600xf32>
    %103 = arith.mulf %102, %8 : vector<5x600xf32>
    %104 = arith.addf %98, %103 : vector<5x600xf32>
    %cst_30 = arith.constant 0.000000e+00 : f32
    %105 = vector.broadcast %cst_30 : f32 to vector<5x600xf32>
    %106 = arith.maximumf %104, %105 : vector<5x600xf32>
    %107 = arith.addf %82, %106 : vector<5x600xf32>
    %108 = arith.mulf %106, %106 : vector<5x600xf32>
    %109 = arith.addf %84, %108 : vector<5x600xf32>
    %110 = arith.maximumf %85, %106 : vector<5x600xf32>
    %111 = arith.minimumf %86, %106 : vector<5x600xf32>
    %c4_31 = arith.constant 4 : index
    %c0_32 = arith.constant 0 : index
    %112 = vector.load %arg0[%c4_31, %c0_32] : memref<12x600xf32, #tpu.memory_space<vmem>>, vector<1x600xf32>
    %113 = vector.shape_cast %112 : vector<1x600xf32> to vector<600xf32>
    %114 = vector.shape_cast %113 : vector<600xf32> to vector<1x600xf32>
    %115 = vector.broadcast %114 : vector<1x600xf32> to vector<5x600xf32>
    %116 = arith.mulf %115, %2 : vector<5x600xf32>
    %117 = arith.addf %116, %11 : vector<5x600xf32>
    %c5_33 = arith.constant 5 : index
    %c0_34 = arith.constant 0 : index
    %118 = vector.load %arg0[%c5_33, %c0_34] : memref<12x600xf32, #tpu.memory_space<vmem>>, vector<1x600xf32>
    %119 = vector.shape_cast %118 : vector<1x600xf32> to vector<600xf32>
    %120 = vector.shape_cast %119 : vector<600xf32> to vector<1x600xf32>
    %121 = vector.broadcast %120 : vector<1x600xf32> to vector<5x600xf32>
    %122 = arith.mulf %121, %5 : vector<5x600xf32>
    %123 = arith.addf %117, %122 : vector<5x600xf32>
    %c6 = arith.constant 6 : index
    %c0_35 = arith.constant 0 : index
    %124 = vector.load %arg0[%c6, %c0_35] : memref<12x600xf32, #tpu.memory_space<vmem>>, vector<1x600xf32>
    %125 = vector.shape_cast %124 : vector<1x600xf32> to vector<600xf32>
    %126 = vector.shape_cast %125 : vector<600xf32> to vector<1x600xf32>
    %127 = vector.broadcast %126 : vector<1x600xf32> to vector<5x600xf32>
    %128 = arith.mulf %127, %8 : vector<5x600xf32>
    %129 = arith.addf %123, %128 : vector<5x600xf32>
    %cst_36 = arith.constant 0.000000e+00 : f32
    %130 = vector.broadcast %cst_36 : f32 to vector<5x600xf32>
    %131 = arith.maximumf %129, %130 : vector<5x600xf32>
    %132 = arith.addf %107, %131 : vector<5x600xf32>
    %133 = arith.mulf %131, %131 : vector<5x600xf32>
    %134 = arith.addf %109, %133 : vector<5x600xf32>
    %135 = arith.maximumf %110, %131 : vector<5x600xf32>
    %136 = arith.minimumf %111, %131 : vector<5x600xf32>
    %c5_37 = arith.constant 5 : index
    %c0_38 = arith.constant 0 : index
    %137 = vector.load %arg0[%c5_37, %c0_38] : memref<12x600xf32, #tpu.memory_space<vmem>>, vector<1x600xf32>
    %138 = vector.shape_cast %137 : vector<1x600xf32> to vector<600xf32>
    %139 = vector.shape_cast %138 : vector<600xf32> to vector<1x600xf32>
    %140 = vector.broadcast %139 : vector<1x600xf32> to vector<5x600xf32>
    %141 = arith.mulf %140, %2 : vector<5x600xf32>
    %142 = arith.addf %141, %11 : vector<5x600xf32>
    %c6_39 = arith.constant 6 : index
    %c0_40 = arith.constant 0 : index
    %143 = vector.load %arg0[%c6_39, %c0_40] : memref<12x600xf32, #tpu.memory_space<vmem>>, vector<1x600xf32>
    %144 = vector.shape_cast %143 : vector<1x600xf32> to vector<600xf32>
    %145 = vector.shape_cast %144 : vector<600xf32> to vector<1x600xf32>
    %146 = vector.broadcast %145 : vector<1x600xf32> to vector<5x600xf32>
    %147 = arith.mulf %146, %5 : vector<5x600xf32>
    %148 = arith.addf %142, %147 : vector<5x600xf32>
    %c7 = arith.constant 7 : index
    %c0_41 = arith.constant 0 : index
    %149 = vector.load %arg0[%c7, %c0_41] : memref<12x600xf32, #tpu.memory_space<vmem>>, vector<1x600xf32>
    %150 = vector.shape_cast %149 : vector<1x600xf32> to vector<600xf32>
    %151 = vector.shape_cast %150 : vector<600xf32> to vector<1x600xf32>
    %152 = vector.broadcast %151 : vector<1x600xf32> to vector<5x600xf32>
    %153 = arith.mulf %152, %8 : vector<5x600xf32>
    %154 = arith.addf %148, %153 : vector<5x600xf32>
    %cst_42 = arith.constant 0.000000e+00 : f32
    %155 = vector.broadcast %cst_42 : f32 to vector<5x600xf32>
    %156 = arith.maximumf %154, %155 : vector<5x600xf32>
    %157 = arith.addf %132, %156 : vector<5x600xf32>
    %158 = arith.mulf %156, %156 : vector<5x600xf32>
    %159 = arith.addf %134, %158 : vector<5x600xf32>
    %160 = arith.maximumf %135, %156 : vector<5x600xf32>
    %161 = arith.minimumf %136, %156 : vector<5x600xf32>
    %c6_43 = arith.constant 6 : index
    %c0_44 = arith.constant 0 : index
    %162 = vector.load %arg0[%c6_43, %c0_44] : memref<12x600xf32, #tpu.memory_space<vmem>>, vector<1x600xf32>
    %163 = vector.shape_cast %162 : vector<1x600xf32> to vector<600xf32>
    %164 = vector.shape_cast %163 : vector<600xf32> to vector<1x600xf32>
    %165 = vector.broadcast %164 : vector<1x600xf32> to vector<5x600xf32>
    %166 = arith.mulf %165, %2 : vector<5x600xf32>
    %167 = arith.addf %166, %11 : vector<5x600xf32>
    %c7_45 = arith.constant 7 : index
    %c0_46 = arith.constant 0 : index
    %168 = vector.load %arg0[%c7_45, %c0_46] : memref<12x600xf32, #tpu.memory_space<vmem>>, vector<1x600xf32>
    %169 = vector.shape_cast %168 : vector<1x600xf32> to vector<600xf32>
    %170 = vector.shape_cast %169 : vector<600xf32> to vector<1x600xf32>
    %171 = vector.broadcast %170 : vector<1x600xf32> to vector<5x600xf32>
    %172 = arith.mulf %171, %5 : vector<5x600xf32>
    %173 = arith.addf %167, %172 : vector<5x600xf32>
    %c8 = arith.constant 8 : index
    %c0_47 = arith.constant 0 : index
    %174 = vector.load %arg0[%c8, %c0_47] : memref<12x600xf32, #tpu.memory_space<vmem>>, vector<1x600xf32>
    %175 = vector.shape_cast %174 : vector<1x600xf32> to vector<600xf32>
    %176 = vector.shape_cast %175 : vector<600xf32> to vector<1x600xf32>
    %177 = vector.broadcast %176 : vector<1x600xf32> to vector<5x600xf32>
    %178 = arith.mulf %177, %8 : vector<5x600xf32>
    %179 = arith.addf %173, %178 : vector<5x600xf32>
    %cst_48 = arith.constant 0.000000e+00 : f32
    %180 = vector.broadcast %cst_48 : f32 to vector<5x600xf32>
    %181 = arith.maximumf %179, %180 : vector<5x600xf32>
    %182 = arith.addf %157, %181 : vector<5x600xf32>
    %183 = arith.mulf %181, %181 : vector<5x600xf32>
    %184 = arith.addf %159, %183 : vector<5x600xf32>
    %185 = arith.maximumf %160, %181 : vector<5x600xf32>
    %186 = arith.minimumf %161, %181 : vector<5x600xf32>
    %c7_49 = arith.constant 7 : index
    %c0_50 = arith.constant 0 : index
    %187 = vector.load %arg0[%c7_49, %c0_50] : memref<12x600xf32, #tpu.memory_space<vmem>>, vector<1x600xf32>
    %188 = vector.shape_cast %187 : vector<1x600xf32> to vector<600xf32>
    %189 = vector.shape_cast %188 : vector<600xf32> to vector<1x600xf32>
    %190 = vector.broadcast %189 : vector<1x600xf32> to vector<5x600xf32>
    %191 = arith.mulf %190, %2 : vector<5x600xf32>
    %192 = arith.addf %191, %11 : vector<5x600xf32>
    %c8_51 = arith.constant 8 : index
    %c0_52 = arith.constant 0 : index
    %193 = vector.load %arg0[%c8_51, %c0_52] : memref<12x600xf32, #tpu.memory_space<vmem>>, vector<1x600xf32>
    %194 = vector.shape_cast %193 : vector<1x600xf32> to vector<600xf32>
    %195 = vector.shape_cast %194 : vector<600xf32> to vector<1x600xf32>
    %196 = vector.broadcast %195 : vector<1x600xf32> to vector<5x600xf32>
    %197 = arith.mulf %196, %5 : vector<5x600xf32>
    %198 = arith.addf %192, %197 : vector<5x600xf32>
    %c9 = arith.constant 9 : index
    %c0_53 = arith.constant 0 : index
    %199 = vector.load %arg0[%c9, %c0_53] : memref<12x600xf32, #tpu.memory_space<vmem>>, vector<1x600xf32>
    %200 = vector.shape_cast %199 : vector<1x600xf32> to vector<600xf32>
    %201 = vector.shape_cast %200 : vector<600xf32> to vector<1x600xf32>
    %202 = vector.broadcast %201 : vector<1x600xf32> to vector<5x600xf32>
    %203 = arith.mulf %202, %8 : vector<5x600xf32>
    %204 = arith.addf %198, %203 : vector<5x600xf32>
    %cst_54 = arith.constant 0.000000e+00 : f32
    %205 = vector.broadcast %cst_54 : f32 to vector<5x600xf32>
    %206 = arith.maximumf %204, %205 : vector<5x600xf32>
    %207 = arith.addf %182, %206 : vector<5x600xf32>
    %208 = arith.mulf %206, %206 : vector<5x600xf32>
    %209 = arith.addf %184, %208 : vector<5x600xf32>
    %210 = arith.maximumf %185, %206 : vector<5x600xf32>
    %211 = arith.minimumf %186, %206 : vector<5x600xf32>
    %c8_55 = arith.constant 8 : index
    %c0_56 = arith.constant 0 : index
    %212 = vector.load %arg0[%c8_55, %c0_56] : memref<12x600xf32, #tpu.memory_space<vmem>>, vector<1x600xf32>
    %213 = vector.shape_cast %212 : vector<1x600xf32> to vector<600xf32>
    %214 = vector.shape_cast %213 : vector<600xf32> to vector<1x600xf32>
    %215 = vector.broadcast %214 : vector<1x600xf32> to vector<5x600xf32>
    %216 = arith.mulf %215, %2 : vector<5x600xf32>
    %217 = arith.addf %216, %11 : vector<5x600xf32>
    %c9_57 = arith.constant 9 : index
    %c0_58 = arith.constant 0 : index
    %218 = vector.load %arg0[%c9_57, %c0_58] : memref<12x600xf32, #tpu.memory_space<vmem>>, vector<1x600xf32>
    %219 = vector.shape_cast %218 : vector<1x600xf32> to vector<600xf32>
    %220 = vector.shape_cast %219 : vector<600xf32> to vector<1x600xf32>
    %221 = vector.broadcast %220 : vector<1x600xf32> to vector<5x600xf32>
    %222 = arith.mulf %221, %5 : vector<5x600xf32>
    %223 = arith.addf %217, %222 : vector<5x600xf32>
    %c10 = arith.constant 10 : index
    %c0_59 = arith.constant 0 : index
    %224 = vector.load %arg0[%c10, %c0_59] : memref<12x600xf32, #tpu.memory_space<vmem>>, vector<1x600xf32>
    %225 = vector.shape_cast %224 : vector<1x600xf32> to vector<600xf32>
    %226 = vector.shape_cast %225 : vector<600xf32> to vector<1x600xf32>
    %227 = vector.broadcast %226 : vector<1x600xf32> to vector<5x600xf32>
    %228 = arith.mulf %227, %8 : vector<5x600xf32>
    %229 = arith.addf %223, %228 : vector<5x600xf32>
    %cst_60 = arith.constant 0.000000e+00 : f32
    %230 = vector.broadcast %cst_60 : f32 to vector<5x600xf32>
    %231 = arith.maximumf %229, %230 : vector<5x600xf32>
    %232 = arith.addf %207, %231 : vector<5x600xf32>
    %233 = arith.mulf %231, %231 : vector<5x600xf32>
    %234 = arith.addf %209, %233 : vector<5x600xf32>
    %235 = arith.maximumf %210, %231 : vector<5x600xf32>
    %236 = arith.minimumf %211, %231 : vector<5x600xf32>
    %c9_61 = arith.constant 9 : index
    %c0_62 = arith.constant 0 : index
    %237 = vector.load %arg0[%c9_61, %c0_62] : memref<12x600xf32, #tpu.memory_space<vmem>>, vector<1x600xf32>
    %238 = vector.shape_cast %237 : vector<1x600xf32> to vector<600xf32>
    %239 = vector.shape_cast %238 : vector<600xf32> to vector<1x600xf32>
    %240 = vector.broadcast %239 : vector<1x600xf32> to vector<5x600xf32>
    %241 = arith.mulf %240, %2 : vector<5x600xf32>
    %242 = arith.addf %241, %11 : vector<5x600xf32>
    %c10_63 = arith.constant 10 : index
    %c0_64 = arith.constant 0 : index
    %243 = vector.load %arg0[%c10_63, %c0_64] : memref<12x600xf32, #tpu.memory_space<vmem>>, vector<1x600xf32>
    %244 = vector.shape_cast %243 : vector<1x600xf32> to vector<600xf32>
    %245 = vector.shape_cast %244 : vector<600xf32> to vector<1x600xf32>
    %246 = vector.broadcast %245 : vector<1x600xf32> to vector<5x600xf32>
    %247 = arith.mulf %246, %5 : vector<5x600xf32>
    %248 = arith.addf %242, %247 : vector<5x600xf32>
    %c11 = arith.constant 11 : index
    %c0_65 = arith.constant 0 : index
    %249 = vector.load %arg0[%c11, %c0_65] : memref<12x600xf32, #tpu.memory_space<vmem>>, vector<1x600xf32>
    %250 = vector.shape_cast %249 : vector<1x600xf32> to vector<600xf32>
    %251 = vector.shape_cast %250 : vector<600xf32> to vector<1x600xf32>
    %252 = vector.broadcast %251 : vector<1x600xf32> to vector<5x600xf32>
    %253 = arith.mulf %252, %8 : vector<5x600xf32>
    %254 = arith.addf %248, %253 : vector<5x600xf32>
    %cst_66 = arith.constant 0.000000e+00 : f32
    %255 = vector.broadcast %cst_66 : f32 to vector<5x600xf32>
    %256 = arith.maximumf %254, %255 : vector<5x600xf32>
    %257 = arith.addf %232, %256 : vector<5x600xf32>
    %258 = arith.mulf %256, %256 : vector<5x600xf32>
    %259 = arith.addf %234, %258 : vector<5x600xf32>
    %260 = arith.maximumf %235, %256 : vector<5x600xf32>
    %261 = arith.minimumf %236, %256 : vector<5x600xf32>
    %cst_67 = arith.constant dense<0.000000e+00> : vector<5xf32>
    %262 = vector.multi_reduction <add>, %257, %cst_67 [1] : vector<5x600xf32> to vector<5xf32>
    %263 = vector.shape_cast %262 : vector<5xf32> to vector<5x1xf32>
    %cst_68 = arith.constant 1.66666665E-4 : f32
    %264 = vector.broadcast %cst_68 : f32 to vector<5x1xf32>
    %265 = arith.mulf %263, %264 : vector<5x1xf32>
    %cst_69 = arith.constant dense<0.000000e+00> : vector<5xf32>
    %266 = vector.multi_reduction <add>, %259, %cst_69 [1] : vector<5x600xf32> to vector<5xf32>
    %267 = vector.shape_cast %266 : vector<5xf32> to vector<5x1xf32>
    %cst_70 = arith.constant 1.66666665E-4 : f32
    %268 = vector.broadcast %cst_70 : f32 to vector<5x1xf32>
    %269 = arith.mulf %267, %268 : vector<5x1xf32>
    %270 = arith.mulf %265, %265 : vector<5x1xf32>
    %271 = arith.subf %269, %270 : vector<5x1xf32>
    %cst_71 = arith.constant 0.000000e+00 : f32
    %272 = vector.broadcast %cst_71 : f32 to vector<5x1xf32>
    %273 = arith.maximumf %271, %272 : vector<5x1xf32>
    %c0_72 = arith.constant 0 : index
    %c4_73 = arith.constant 4 : index
    %274 = vector.load %arg1[%c0_72, %c4_73] : memref<8x64xf32, #tpu.memory_space<vmem>>, vector<5x1xf32>
    %cst_74 = arith.constant 9.99999974E-6 : f32
    %275 = vector.broadcast %cst_74 : f32 to vector<5x1xf32>
    %276 = arith.addf %273, %275 : vector<5x1xf32>
    %277 = math.rsqrt %276 : vector<5x1xf32>
    %278 = arith.mulf %274, %277 : vector<5x1xf32>
    %c0_75 = arith.constant 0 : index
    %c5_76 = arith.constant 5 : index
    %279 = vector.load %arg1[%c0_75, %c5_76] : memref<8x64xf32, #tpu.memory_space<vmem>>, vector<5x1xf32>
    %280 = arith.mulf %265, %278 : vector<5x1xf32>
    %281 = arith.subf %279, %280 : vector<5x1xf32>
    %282 = vector.broadcast %278 : vector<5x1xf32> to vector<5x600xf32>
    %283 = arith.mulf %282, %260 : vector<5x600xf32>
    %284 = vector.broadcast %278 : vector<5x1xf32> to vector<5x600xf32>
    %285 = arith.mulf %284, %261 : vector<5x600xf32>
    %286 = arith.maximumf %283, %285 : vector<5x600xf32>
    %287 = vector.broadcast %281 : vector<5x1xf32> to vector<5x600xf32>
    %288 = arith.addf %286, %287 : vector<5x600xf32>
    %289 = tpu.iota {dimensions = array<i32: 1>} : vector<1x600xi32>
    %c0_i32 = arith.constant 0 : i32
    %290 = vector.broadcast %c0_i32 : i32 to vector<1x600xi32>
    %291 = arith.cmpi eq, %289, %290 : vector<1x600xi32>
    %c299_i32 = arith.constant 299 : i32
    %292 = vector.broadcast %c299_i32 : i32 to vector<1x600xi32>
    %293 = arith.cmpi eq, %289, %292 : vector<1x600xi32>
    %c300_i32 = arith.constant 300 : i32
    %294 = vector.broadcast %c300_i32 : i32 to vector<1x600xi32>
    %295 = arith.cmpi eq, %289, %294 : vector<1x600xi32>
    %296 = arith.ori %291, %295 : vector<1x600xi1>
    %c599_i32 = arith.constant 599 : i32
    %297 = vector.broadcast %c599_i32 : i32 to vector<1x600xi32>
    %298 = arith.cmpi eq, %289, %297 : vector<1x600xi32>
    %299 = arith.ori %293, %298 : vector<1x600xi1>
    %cst_77 = arith.constant 0.000000e+00 : f32
    %300 = vector.broadcast %cst_77 : f32 to vector<5x1xf32>
    %301 = vector.extract_strided_slice %288 {offsets = [0, 0], sizes = [5, 599], strides = [1, 1]} : vector<5x600xf32> to vector<5x599xf32>
    %302 = tpu.concatenate %300, %301 in 1 : vector<5x1xf32>, vector<5x599xf32> -> vector<5x600xf32>
    %cst_78 = arith.constant 0.000000e+00 : f32
    %303 = vector.shape_cast %296 : vector<1x600xi1> to vector<1x600xi1>
    %304 = vector.broadcast %303 : vector<1x600xi1> to vector<5x600xi1>
    %305 = vector.broadcast %cst_78 : f32 to vector<5x600xf32>
    %306 = arith.select %304, %305, %302 : vector<5x600xi1>, vector<5x600xf32>
    %307 = vector.extract_strided_slice %288 {offsets = [0, 1], sizes = [5, 599], strides = [1, 1]} : vector<5x600xf32> to vector<5x599xf32>
    %308 = tpu.concatenate %307, %300 in 1 : vector<5x599xf32>, vector<5x1xf32> -> vector<5x600xf32>
    %cst_79 = arith.constant 0.000000e+00 : f32
    %309 = vector.shape_cast %299 : vector<1x600xi1> to vector<1x600xi1>
    %310 = vector.broadcast %309 : vector<1x600xi1> to vector<5x600xi1>
    %311 = vector.broadcast %cst_79 : f32 to vector<5x600xf32>
    %312 = arith.select %310, %311, %308 : vector<5x600xi1>, vector<5x600xf32>
    %c0_80 = arith.constant 0 : index
    %c16 = arith.constant 16 : index
    %313 = vector.load %arg1[%c0_80, %c16] : memref<8x64xf32, #tpu.memory_space<vmem>>, vector<5x1xf32>
    %314 = vector.broadcast %313 : vector<5x1xf32> to vector<5x600xf32>
    %315 = arith.mulf %306, %314 : vector<5x600xf32>
    %c0_81 = arith.constant 0 : index
    %c19 = arith.constant 19 : index
    %316 = vector.load %arg1[%c0_81, %c19] : memref<8x64xf32, #tpu.memory_space<vmem>>, vector<5x1xf32>
    %317 = vector.broadcast %316 : vector<5x1xf32> to vector<5x600xf32>
    %318 = arith.mulf %288, %317 : vector<5x600xf32>
    %319 = arith.addf %315, %318 : vector<5x600xf32>
    %c0_82 = arith.constant 0 : index
    %c22 = arith.constant 22 : index
    %320 = vector.load %arg1[%c0_82, %c22] : memref<8x64xf32, #tpu.memory_space<vmem>>, vector<5x1xf32>
    %321 = vector.broadcast %320 : vector<5x1xf32> to vector<5x600xf32>
    %322 = arith.mulf %312, %321 : vector<5x600xf32>
    %323 = arith.addf %319, %322 : vector<5x600xf32>
    %cst_83 = arith.constant dense<0.000000e+00> : vector<600xf32>
    %324 = vector.multi_reduction <add>, %323, %cst_83 [0] : vector<5x600xf32> to vector<600xf32>
    %325 = vector.shape_cast %324 : vector<600xf32> to vector<1x600xf32>
    %c0_84 = arith.constant 0 : index
    %c17 = arith.constant 17 : index
    %326 = vector.load %arg1[%c0_84, %c17] : memref<8x64xf32, #tpu.memory_space<vmem>>, vector<5x1xf32>
    %327 = vector.broadcast %326 : vector<5x1xf32> to vector<5x600xf32>
    %328 = arith.mulf %306, %327 : vector<5x600xf32>
    %c0_85 = arith.constant 0 : index
    %c20 = arith.constant 20 : index
    %329 = vector.load %arg1[%c0_85, %c20] : memref<8x64xf32, #tpu.memory_space<vmem>>, vector<5x1xf32>
    %330 = vector.broadcast %329 : vector<5x1xf32> to vector<5x600xf32>
    %331 = arith.mulf %288, %330 : vector<5x600xf32>
    %332 = arith.addf %328, %331 : vector<5x600xf32>
    %c0_86 = arith.constant 0 : index
    %c23 = arith.constant 23 : index
    %333 = vector.load %arg1[%c0_86, %c23] : memref<8x64xf32, #tpu.memory_space<vmem>>, vector<5x1xf32>
    %334 = vector.broadcast %333 : vector<5x1xf32> to vector<5x600xf32>
    %335 = arith.mulf %312, %334 : vector<5x600xf32>
    %336 = arith.addf %332, %335 : vector<5x600xf32>
    %cst_87 = arith.constant dense<0.000000e+00> : vector<600xf32>
    %337 = vector.multi_reduction <add>, %336, %cst_87 [0] : vector<5x600xf32> to vector<600xf32>
    %338 = vector.shape_cast %337 : vector<600xf32> to vector<1x600xf32>
    %c0_88 = arith.constant 0 : index
    %c18 = arith.constant 18 : index
    %339 = vector.load %arg1[%c0_88, %c18] : memref<8x64xf32, #tpu.memory_space<vmem>>, vector<5x1xf32>
    %340 = vector.broadcast %339 : vector<5x1xf32> to vector<5x600xf32>
    %341 = arith.mulf %306, %340 : vector<5x600xf32>
    %c0_89 = arith.constant 0 : index
    %c21 = arith.constant 21 : index
    %342 = vector.load %arg1[%c0_89, %c21] : memref<8x64xf32, #tpu.memory_space<vmem>>, vector<5x1xf32>
    %343 = vector.broadcast %342 : vector<5x1xf32> to vector<5x600xf32>
    %344 = arith.mulf %288, %343 : vector<5x600xf32>
    %345 = arith.addf %341, %344 : vector<5x600xf32>
    %c0_90 = arith.constant 0 : index
    %c24 = arith.constant 24 : index
    %346 = vector.load %arg1[%c0_90, %c24] : memref<8x64xf32, #tpu.memory_space<vmem>>, vector<5x1xf32>
    %347 = vector.broadcast %346 : vector<5x1xf32> to vector<5x600xf32>
    %348 = arith.mulf %312, %347 : vector<5x600xf32>
    %349 = arith.addf %345, %348 : vector<5x600xf32>
    %cst_91 = arith.constant dense<0.000000e+00> : vector<600xf32>
    %350 = vector.multi_reduction <add>, %349, %cst_91 [0] : vector<5x600xf32> to vector<600xf32>
    %351 = vector.shape_cast %350 : vector<600xf32> to vector<1x600xf32>
    %352 = tpu.concatenate %325, %338, %351 in 0 : vector<1x600xf32>, vector<1x600xf32>, vector<1x600xf32> -> vector<3x600xf32>
    %c0_92 = arith.constant 0 : index
    %c8_93 = arith.constant 8 : index
    %353 = vector.load %arg1[%c0_92, %c8_93] : memref<8x64xf32, #tpu.memory_space<vmem>>, vector<3x1xf32>
    %354 = vector.broadcast %353 : vector<3x1xf32> to vector<3x600xf32>
    %355 = arith.addf %352, %354 : vector<3x600xf32>
    %cst_94 = arith.constant 0.000000e+00 : f32
    %356 = vector.broadcast %cst_94 : f32 to vector<3x600xf32>
    %357 = arith.maximumf %355, %356 : vector<3x600xf32>
    %cst_95 = arith.constant dense<0.000000e+00> : vector<3xf32>
    %358 = vector.multi_reduction <add>, %357, %cst_95 [1] : vector<3x600xf32> to vector<3xf32>
    %359 = vector.shape_cast %358 : vector<3xf32> to vector<3x1xf32>
    %cst_96 = arith.constant 0.00166666671 : f32
    %360 = vector.broadcast %cst_96 : f32 to vector<3x1xf32>
    %361 = arith.mulf %359, %360 : vector<3x1xf32>
    %362 = arith.mulf %357, %357 : vector<3x600xf32>
    %cst_97 = arith.constant dense<0.000000e+00> : vector<3xf32>
    %363 = vector.multi_reduction <add>, %362, %cst_97 [1] : vector<3x600xf32> to vector<3xf32>
    %364 = vector.shape_cast %363 : vector<3xf32> to vector<3x1xf32>
    %cst_98 = arith.constant 0.00166666671 : f32
    %365 = vector.broadcast %cst_98 : f32 to vector<3x1xf32>
    %366 = arith.mulf %364, %365 : vector<3x1xf32>
    %367 = arith.mulf %361, %361 : vector<3x1xf32>
    %368 = arith.subf %366, %367 : vector<3x1xf32>
    %cst_99 = arith.constant 0.000000e+00 : f32
    %369 = vector.broadcast %cst_99 : f32 to vector<3x1xf32>
    %370 = arith.maximumf %368, %369 : vector<3x1xf32>
    %c0_100 = arith.constant 0 : index
    %c6_101 = arith.constant 6 : index
    %371 = vector.load %arg1[%c0_100, %c6_101] : memref<8x64xf32, #tpu.memory_space<vmem>>, vector<3x1xf32>
    %cst_102 = arith.constant 9.99999974E-6 : f32
    %372 = vector.broadcast %cst_102 : f32 to vector<3x1xf32>
    %373 = arith.addf %370, %372 : vector<3x1xf32>
    %374 = math.rsqrt %373 : vector<3x1xf32>
    %375 = arith.mulf %371, %374 : vector<3x1xf32>
    %c0_103 = arith.constant 0 : index
    %c7_104 = arith.constant 7 : index
    %376 = vector.load %arg1[%c0_103, %c7_104] : memref<8x64xf32, #tpu.memory_space<vmem>>, vector<3x1xf32>
    %377 = arith.mulf %361, %375 : vector<3x1xf32>
    %378 = arith.subf %376, %377 : vector<3x1xf32>
    %379 = vector.broadcast %375 : vector<3x1xf32> to vector<3x600xf32>
    %380 = arith.mulf %357, %379 : vector<3x600xf32>
    %381 = vector.broadcast %378 : vector<3x1xf32> to vector<3x600xf32>
    %382 = arith.addf %380, %381 : vector<3x600xf32>
    %383 = vector.extract_strided_slice %382 {offsets = [0, 1], sizes = [3, 599], strides = [1, 1]} : vector<3x600xf32> to vector<3x599xf32>
    %cst_105 = arith.constant 0.000000e+00 : f32
    %384 = vector.broadcast %cst_105 : f32 to vector<3x1xf32>
    %385 = tpu.concatenate %383, %384 in 1 : vector<3x599xf32>, vector<3x1xf32> -> vector<3x600xf32>
    %386 = arith.maximumf %382, %385 : vector<3x600xf32>
    %387 = vector.extract_strided_slice %386 {offsets = [0, 2], sizes = [3, 598], strides = [1, 1]} : vector<3x600xf32> to vector<3x598xf32>
    %cst_106 = arith.constant 0.000000e+00 : f32
    %388 = vector.broadcast %cst_106 : f32 to vector<3x2xf32>
    %389 = tpu.concatenate %387, %388 in 1 : vector<3x598xf32>, vector<3x2xf32> -> vector<3x600xf32>
    %390 = arith.maximumf %386, %389 : vector<3x600xf32>
    %c0_107 = arith.constant 0 : index
    %c9_108 = arith.constant 9 : index
    %391 = vector.load %arg1[%c0_107, %c9_108] : memref<8x64xf32, #tpu.memory_space<vmem>>, vector<1x3xf32>
    %392 = vector.shape_cast %391 : vector<1x3xf32> to vector<1x3xf32>
    %393 = vector.broadcast %392 : vector<1x3xf32> to vector<2x3xf32>
    %c0_109 = arith.constant 0 : index
    %c0_110 = arith.constant 0 : index
    %c0_111 = arith.constant 0 : index
    %c0_112 = arith.constant 0 : index
    %394 = vector.load %arg2[%c0_109, %c0_110, %c0_111, %c0_112] : memref<3x2x3x600xf32, #tpu.memory_space<vmem>>, vector<1x2x3x600xf32>
    %395 = vector.shape_cast %394 : vector<1x2x3x600xf32> to vector<2x3x600xf32>
    %396 = vector.extract_strided_slice %390 {offsets = [0, 0], sizes = [1, 600], strides = [1, 1]} : vector<3x600xf32> to vector<1x600xf32>
    %397 = vector.shape_cast %396 : vector<1x600xf32> to vector<600xf32>
    %398 = vector.shape_cast %397 : vector<600xf32> to vector<1x1x600xf32>
    %399 = vector.broadcast %398 : vector<1x1x600xf32> to vector<2x3x600xf32>
    %400 = arith.mulf %395, %399 : vector<2x3x600xf32>
    %cst_113 = arith.constant dense<0.000000e+00> : vector<2x3xf32>
    %401 = vector.multi_reduction <add>, %400, %cst_113 [2] : vector<2x3x600xf32> to vector<2x3xf32>
    %402 = arith.addf %393, %401 : vector<2x3xf32>
    %c1_114 = arith.constant 1 : index
    %c0_115 = arith.constant 0 : index
    %c0_116 = arith.constant 0 : index
    %c0_117 = arith.constant 0 : index
    %403 = vector.load %arg2[%c1_114, %c0_115, %c0_116, %c0_117] : memref<3x2x3x600xf32, #tpu.memory_space<vmem>>, vector<1x2x3x600xf32>
    %404 = vector.shape_cast %403 : vector<1x2x3x600xf32> to vector<2x3x600xf32>
    %405 = vector.extract_strided_slice %390 {offsets = [1, 0], sizes = [1, 600], strides = [1, 1]} : vector<3x600xf32> to vector<1x600xf32>
    %406 = vector.shape_cast %405 : vector<1x600xf32> to vector<600xf32>
    %407 = vector.shape_cast %406 : vector<600xf32> to vector<1x1x600xf32>
    %408 = vector.broadcast %407 : vector<1x1x600xf32> to vector<2x3x600xf32>
    %409 = arith.mulf %404, %408 : vector<2x3x600xf32>
    %cst_118 = arith.constant dense<0.000000e+00> : vector<2x3xf32>
    %410 = vector.multi_reduction <add>, %409, %cst_118 [2] : vector<2x3x600xf32> to vector<2x3xf32>
    %411 = arith.addf %402, %410 : vector<2x3xf32>
    %c2_119 = arith.constant 2 : index
    %c0_120 = arith.constant 0 : index
    %c0_121 = arith.constant 0 : index
    %c0_122 = arith.constant 0 : index
    %412 = vector.load %arg2[%c2_119, %c0_120, %c0_121, %c0_122] : memref<3x2x3x600xf32, #tpu.memory_space<vmem>>, vector<1x2x3x600xf32>
    %413 = vector.shape_cast %412 : vector<1x2x3x600xf32> to vector<2x3x600xf32>
    %414 = vector.extract_strided_slice %390 {offsets = [2, 0], sizes = [1, 600], strides = [1, 1]} : vector<3x600xf32> to vector<1x600xf32>
    %415 = vector.shape_cast %414 : vector<1x600xf32> to vector<600xf32>
    %416 = vector.shape_cast %415 : vector<600xf32> to vector<1x1x600xf32>
    %417 = vector.broadcast %416 : vector<1x1x600xf32> to vector<2x3x600xf32>
    %418 = arith.mulf %413, %417 : vector<2x3x600xf32>
    %cst_123 = arith.constant dense<0.000000e+00> : vector<2x3xf32>
    %419 = vector.multi_reduction <add>, %418, %cst_123 [2] : vector<2x3x600xf32> to vector<2x3xf32>
    %420 = arith.addf %411, %419 : vector<2x3xf32>
    %cst_124 = arith.constant dense<0xFF800000> : vector<2xf32>
    %421 = vector.multi_reduction <maximumf>, %420, %cst_124 [1] : vector<2x3xf32> to vector<2xf32>
    %422 = vector.shape_cast %421 : vector<2xf32> to vector<2x1xf32>
    %423 = vector.broadcast %422 : vector<2x1xf32> to vector<2x3xf32>
    %424 = arith.subf %420, %423 : vector<2x3xf32>
    %425 = math.exp %424 : vector<2x3xf32>
    %cst_125 = arith.constant dense<0.000000e+00> : vector<2xf32>
    %426 = vector.multi_reduction <add>, %425, %cst_125 [1] : vector<2x3xf32> to vector<2xf32>
    %427 = vector.shape_cast %426 : vector<2xf32> to vector<2x1xf32>
    %428 = math.log %427 : vector<2x1xf32>
    %429 = vector.broadcast %428 : vector<2x1xf32> to vector<2x3xf32>
    %430 = arith.subf %424, %429 : vector<2x3xf32>
    %c0_126 = arith.constant 0 : index
    %c0_127 = arith.constant 0 : index
    %431 = vector.load %arg3[%c0_126, %c0_127] : memref<2x3xf32, #tpu.memory_space<vmem>>, vector<2x3xf32>
    tpu.vector_store %arg3[%c0_126, %c0_127], %430 {strides = array<i32>} : memref<2x3xf32, #tpu.memory_space<vmem>>, vector<2x3xf32>,
    return
  }
}

</mosaic_0001>

<bundles_post_ra>
// kernel: clf_forward.1
= control target key start
LH: loop header
LB: loop body
LE: loop exit
PB: predicated region body
PF: predicated region fallthrough
CT: control target
= control target key end

     0   :  { %v1947_v1 = vmov 0   ;;  %v1948_v2 = vmov 3   ;;  %s3456_s0 = inlined_call_operand.vmem [shape: f32[12,600], index: 0, kind: input, shape index: {}]   ;;  %s3457_s1 = inlined_call_operand.vmem [shape: f32[8,64], index: 1, kind: input, shape index: {}]   ;;  %s3458_s2 = inlined_call_operand.vmem [shape: f32[3,2,3,600], index: 2, kind: input, shape index: {}]   ;;  %s3459_s3 = inlined_call_operand.hbm [shape: f32[2,3], index: 3, kind: output, shape index: {}]  }
   0x1   :  { %v15_v0 = vld [vmem:[%s3457_s1] sm:$0x1f]  ;;  %1898 = vset.pattern.permute.xlu0 %v1947_v1  ;;  %1900 = vset.pattern.permute.xlu1 %v1948_v2 }
   0x2   :  { %18 = vperm.xlu0 %1898, %v15_v0   ;;  %30 = vperm.xlu1 %1900, %v15_v0  }
   0x3   :  { %8 = vsyncpa [#allocation3], 0  ;;  %v1949_v3 = vmov 1   ;;  %v1950_v4 = vmov 2   ;;  %v3460_v5 = vlaneseq  ;;  %vm982_vm0 = vcmask 1044480   ;;  %s1953_s9 = smov 1  }
   0x4   :  { %v33_v7 = vld [vmem:[%s3456_s0] ss:$8 sm:$0xf]  ;;  %v1840_v9 = vld [vmem:[%s3456_s0 + $0x1] ss:$8 sm:$0xf] }
   0x5   :  { %v1994_v6 = vshrl.u32 %v3460_v5, 7  ;;  %v34_v8 = vld [vmem:[%s3456_s0] ss:$8 sm:$0x10]  ;;  %vm990_vm1 = vcmask 716800   ;;  %s1964_s10 = smov 127  }
   0x6   :  { %1899 = vset.pattern.permute.xlu0 %v1949_v3  ;;  %1901 = vset.pattern.permute.xlu1 %v1950_v4  ;;  %v1841_v10 = vld [vmem:[%s3456_s0 + $0x1] ss:$8 sm:$0x10]  ;;  %v1842_v11 = vld [vmem:[%s3456_s0 + $0x2] ss:$8 sm:$0xf]  ;;  %v2011_v12 = vor.u32 %v34_v8, %v33_v7 }
   0x7   :  { %22 = vperm.xlu0 %1899, %v15_v0   ;;  %26 = vperm.xlu1 %1901, %v15_v0   ;;  %3519 = vst [vmem:[#allocation5_spill] sm:$0xff] %v1994_v6  ;;  %v2014_v13 = vsub.s32 0, %v1994_v6  ;;  %v1843_v14 = vld [vmem:[%s3456_s0 + $0x2] ss:$8 sm:$0x10]  ;;  %v2020_v15 = vsub.s32 1, %v1994_v6  ;;  %v75_v20 = vor.u32 %v1841_v10, %v1840_v9 }
   0x8   :  { %v2023_v16 = vsub.s32 2, %v1994_v6  ;;  %v2026_v17 = vsub.s32 3, %v1994_v6  ;;  %v1844_v18 = vld [vmem:[%s3456_s0 + $0x3] ss:$8 sm:$0xf]  ;;  %v2032_v19 = vsub.s32 4, %v1994_v6  ;;  %v115_v22 = vor.u32 %v1843_v14, %v1842_v11 }
   0x9   :  { %3520 = vst [vmem:[#allocation6_spill] sm:$0xff] %v2014_v13  ;;  %3521 = vst [vmem:[#allocation7_spill] sm:$0xff] %v2020_v15  ;;  %v1845_v21 = vld [vmem:[%s3456_s0 + $0x3] ss:$8 sm:$0x10]  ;;  %v2060_v33 = vrot.slane %v75_v20, %v2014_v13  ;;  %v2063_v34 = vrot.slane %v75_v20, %v2020_v15  ;;  %v3545_v28 = vrot.slane %v2011_v12, %v2014_v13  ;;  %vm1101_vm2 = vcmask 7168  }
   0xa   :  { %3522 = vst [vmem:[#allocation8_spill] sm:$0xff] %v2023_v16  ;;  %3523 = vst [vmem:[#allocation9_spill] sm:$0xff] %v2026_v17  ;;  %v1846_v23 = vld [vmem:[%s3456_s0 + $0x4] ss:$8 sm:$0xf]  ;;  %v195_v29 = vor.u32 %v1845_v21, %v1844_v18  ;;  %v2072_v38 = vrot.slane %v75_v20, %v2023_v16  ;;  %v2075_v39 = vrot.slane %v75_v20, %v2026_v17  ;;  %vm1137_vm5 = vcmask 1039360  }
   0xb   :  { %3524 = vst [vmem:[#allocation10_spill] sm:$0xff] %v2032_v19  ;;  %v1847_v24 = vld [vmem:[%s3456_s0 + $0x4] ss:$8 sm:$0x10]  ;;  %v2078_v40 = vrot.slane %v75_v20, %v2032_v19  ;;  %v2081_v41 = vrot.slane %v115_v22, %v2014_v13  ;;  %v2084_v42 = vrot.slane %v115_v22, %v2020_v15  ;;  %v2087_v43 = vrot.slane %v115_v22, %v2023_v16  ;;  %s1967_s13 = smov 126   ;;  %s1969_s23 = smov [#allocation2]  }
   0xc   :  { %v1848_v30 = vld [vmem:[%s3456_s0 + $0x5] ss:$8 sm:$0xf]  ;;  %v285_v35 = vor.u32 %v1847_v24, %v1846_v23  ;;  %v1850_v36 = vld [vmem:[%s3456_s0 + $0x6] ss:$8 sm:$0xf]  ;;  %v2090_v44 = vrot.slane %v115_v22, %v2026_v17  ;;  %v2099_v48 = vrot.slane %v115_v22, %v2032_v19  ;;  %v2102_v49 = vrot.slane %v195_v29, %v2014_v13 }
   0xd   :  { %v1849_v31 = vld [vmem:[%s3456_s0 + $0x5] ss:$8 sm:$0x10]  ;;  %v1851_v37 = vld [vmem:[%s3456_s0 + $0x6] ss:$8 sm:$0x10]  ;;  %v2105_v50 = vrot.slane %v195_v29, %v2020_v15  ;;  %v2108_v52 = vrot.slane %v195_v29, %v2023_v16  ;;  %v2111_v53 = vrot.slane %v195_v29, %v2026_v17  ;;  %v2114_v54 = vrot.slane %v195_v29, %v2032_v19 }
   0xe   :  { %v375_v45 = vor.u32 %v1849_v31, %v1848_v30  ;;  %v1852_v46 = vld [vmem:[%s3456_s0 + $0x7] ss:$8 sm:$0xf]  ;;  %v465_v51 = vor.u32 %v1851_v37, %v1850_v36  ;;  %v2117_v55 = vrot.slane %v285_v35, %v2014_v13  ;;  %v1854_v56 = vld [vmem:[%s3456_s0 + $0x28] ss:$8 sm:$0xf]  ;;  %v2126_v58 = vrot.slane %v285_v35, %v2020_v15 }
   0xf   :  { %v1853_v47 = vld [vmem:[%s3456_s0 + $0x7] ss:$8 sm:$0x10]  ;;  %v1855_v57 = vld [vmem:[%s3456_s0 + $0x28] ss:$8 sm:$0x10]  ;;  %v2129_v59 = vrot.slane %v285_v35, %v2023_v16  ;;  %v2132_v60 = vrot.slane %v285_v35, %v2026_v17  ;;  %v2141_v0 = vrot.slane %v285_v35, %v2032_v19  ;;  %v3547_v25 = vrot.slane %v2011_v12, %v2023_v16 }
  0x10   :  { %v555_v61 = vor.u32 %v1853_v47, %v1852_v46  ;;  %v1856_v62 = vld [vmem:[%s3456_s0 + $0x29] ss:$8 sm:$0xf]  ;;  %v2144_v1 = vrot.slane %v375_v45, %v2014_v13  ;;  %v2147_v2 = vrot.slane %v375_v45, %v2020_v15  ;;  %v2150_v3 = vrot.slane %v375_v45, %v2023_v16  ;;  %v1858_v4 = vld [vmem:[%s3456_s0 + $0x2a] ss:$8 sm:$0xf] }
  0x11   :  { %v1857_v63 = vld [vmem:[%s3456_s0 + $0x29] ss:$8 sm:$0x10]  ;;  %v1859_v7 = vld [vmem:[%s3456_s0 + $0x2a] ss:$8 sm:$0x10]  ;;  %v2159_v8 = vrot.slane %v375_v45, %v2026_v17  ;;  %v2162_v9 = vrot.slane %v375_v45, %v2032_v19  ;;  %v2165_v10 = vrot.slane %v465_v51, %v2014_v13  ;;  %v645_v11 = vor.u32 %v1855_v57, %v1854_v56 }
  0x12   :  { %v1860_v14 = vld [vmem:[%s3456_s0 + $0x2b] ss:$8 sm:$0xf]  ;;  %v2174_v20 = vrot.slane %v465_v51, %v2020_v15  ;;  %v2177_v21 = vrot.slane %v465_v51, %v2023_v16  ;;  %v2180_v22 = vrot.slane %v465_v51, %v2026_v17  ;;  %v735_v23 = vor.u32 %v1857_v63, %v1856_v62  ;;  %s1832_s24 = sshll.u32 %s1969_s23, 4  ;;  %s1833_s24 = int_to_ptr.vmem [resolvable:$true] %s1832_s24 }
  0x13   :  { %v1861_v18 = vld [vmem:[%s3456_s0 + $0x2b] ss:$8 sm:$0x10]  ;;  %v2183_v24 = vrot.slane %v465_v51, %v2032_v19  ;;  %v2186_v29 = vrot.slane %v555_v61, %v2014_v13  ;;  %v2189_v30 = vrot.slane %v555_v61, %v2020_v15  ;;  %v825_v31 = vor.u32 %v1859_v7, %v1858_v4  ;;  %s1925_s25 = scalar_lea.vmem %s1833_s24, 32  ;;  %p1930_p1 = scmp.lt.s32.totalorder %s1833_s24, %s1833_s24 }
  0x14   :  { %v2192_v35 = vrot.slane %v555_v61, %v2023_v16  ;;  %v2195_v36 = vrot.slane %v555_v61, %v2026_v17  ;;  %v2198_v37 = vrot.slane %v555_v61, %v2032_v19  ;;  %v2200_v45 = vor.u32 %v1861_v18, %v1860_v14  ;;  %p1926_p0 = scmp.ne.s32.totalorder %s1833_s24, %s1925_s25  ;;  %p1931_p2 = scmp.lt.s32.totalorder %s1925_s25, %s1925_s25 }
  0x15   :  { %3525 = vst [vmem:[#allocation11_spill] sm:$0xff] %v2189_v30  ;;  %v2203_v46 = vrot.slane %v645_v11, %v2014_v13  ;;  %v2206_v47 = vrot.slane %v645_v11, %v2020_v15  ;;  %v2209_v51 = vrot.slane %v645_v11, %v2023_v16  ;;  %v2212_v56 = vrot.slane %v645_v11, %v2026_v17 }
  0x16   :  { %3526 = vst [vmem:[#allocation12_spill] sm:$0xff] %v2192_v35  ;;  %3527 = vst [vmem:[#allocation13_spill] sm:$0xff] %v2195_v36  ;;  %v2215_v57 = vrot.slane %v645_v11, %v2032_v19  ;;  %v2218_v61 = vrot.slane %v735_v23, %v2014_v13  ;;  %v2221_v62 = vrot.slane %v735_v23, %v2020_v15  ;;  %vm1147_vm6 = vcmask 711680   ;;  %p1932_p3 = por %p1931_p2, %p1930_p1 }
  0x17   :  { %3528 = vst [vmem:[#allocation14_spill] sm:$0xff] %v2198_v37  ;;  %3529 = vst [vmem:[#allocation15_spill] sm:$0xff] %v2200_v45  ;;  %v2224_v63 = vrot.slane %v735_v23, %v2023_v16  ;;  %v2227_v4 = vrot.slane %v735_v23, %v2026_v17  ;;  %v2230_v7 = vrot.slane %v735_v23, %v2032_v19  ;;  %vm1380_vm9 = vcmask 1040384  }
  0x18   :  { %3530 = vst [vmem:[#allocation16_spill] sm:$0xff] %v2203_v46  ;;  %3531 = vst [vmem:[#allocation17_spill] sm:$0xff] %v2206_v47  ;;  %v2233_v14 = vrot.slane %v825_v31, %v2014_v13  ;;  %v2236_v11 = vrot.slane %v825_v31, %v2020_v15  ;;  %v2239_v18 = vrot.slane %v825_v31, %v2023_v16  ;;  %vm1386_vm10 = vcmask 1041408   ;;  %p1933_p4 = pnand %p1932_p3, %p1926_p0 }
  0x19   :  { %3532 = vst [vmem:[#allocation18_spill] sm:$0xff] %v2209_v51  ;;  %3533 = vst [vmem:[#allocation19_spill] sm:$0xff] %v2212_v56  ;;  %v2242_v5 = vrot.slane %v825_v31, %v2026_v17  ;;  %v2245_v32 = vrot.slane %v825_v31, %v2032_v19  ;;  %v3548_v6 = vrot.slane %v2011_v12, %v2026_v17  ;;  %vm1408_vm11 = vcmask 1042432  }
  0x1a   :  { %3534 = vst [vmem:[#allocation20_spill] sm:$0xff] %v2215_v57  ;;  %3535 = vst [vmem:[#allocation21_spill] sm:$0xff] %v2218_v61  ;;  %v3549_v13 = vrot.slane %v2011_v12, %v2032_v19  ;;  %vm1416_vm12 = vcmask 714752   ;;  %vm1516_vm13 = vcmask 1031168   ;;  %vm1526_vm14 = vcmask 703488  }
  0x1b   :  { %3536 = vst [vmem:[#allocation22_spill] sm:$0xff] %v2221_v62  ;;  %3537 = vst [vmem:[#allocation23_spill] sm:$0xff] %v2224_v63  ;;  %vm1623_vm15 = vcmask 1041409  }
  0x1c   :  { %3538 = vst [vmem:[#allocation24_spill] sm:$0xff] %v2227_v4  ;;  %3539 = vst [vmem:[#allocation25_spill] sm:$0xff] %v2230_v7 }
  0x1d   :  { %3540 = vst [vmem:[#allocation26_spill] sm:$0xff] %v2233_v14  ;;  %3541 = vst [vmem:[#allocation27_spill] sm:$0xff] %v2236_v11 }
  0x1e   :  { %3542 = vst [vmem:[#allocation28_spill] sm:$0xff] %v2239_v18  ;;  %3543 = vst [vmem:[#allocation29_spill] sm:$0xff] %v2242_v5  ;;  %v3546_v5 = vrot.slane %v2011_v12, %v2020_v15 }
  0x1f   :  { %3544 = vst [vmem:[#allocation30_spill] sm:$0xff] %v2245_v32 }
  0x7d   :  { %v2249_v23 = vpop.permute.xlu0 %18  ;;  %v2251_v27 = vpop.permute.xlu1 %30 }
  0x7e   :  { %v62_v32 = vmul.f32 %v3545_v28, %v2249_v23  ;;  %v63_v18 = vmul.f32 %v3546_v5, %v2249_v23  ;;  %v64_v26 = vmul.f32 %v3547_v25, %v2249_v23  ;;  %v65_v31 = vmul.f32 %v3548_v6, %v2249_v23 }
  0x7f   :  { %v66_v28 = vmul.f32 %v3549_v13, %v2249_v23  ;;  %v172_v45 = vmul.f32 %v2060_v33, %v2249_v23  ;;  %v173_v5 = vmul.f32 %v2063_v34, %v2249_v23  ;;  %v174_v16 = vmul.f32 %v2072_v38, %v2249_v23 }
  0x80   :  { %v67_v25 = vadd.f32 %v62_v32, %v2251_v27  ;;  %v68_v15 = vadd.f32 %v63_v18, %v2251_v27  ;;  %v69_v6 = vadd.f32 %v64_v26, %v2251_v27  ;;  %v70_v17 = vadd.f32 %v65_v31, %v2251_v27 }
  0x81   :  { %v71_v12 = vadd.f32 %v66_v28, %v2251_v27  ;;  %v175_v13 = vmul.f32 %v2075_v39, %v2249_v23  ;;  %v176_v19 = vmul.f32 %v2078_v40, %v2249_v23  ;;  %v177_v11 = vadd.f32 %v172_v45, %v2251_v27 }
  0x82   :  { %v2297_v14 = vpop.permute.xlu0 %22  ;;  %v2299_v7 = vpop.permute.xlu1 %26  ;;  %v178_v32 = vadd.f32 %v173_v5, %v2251_v27  ;;  %v179_v26 = vadd.f32 %v174_v16, %v2251_v27  ;;  %v262_v18 = vmul.f32 %v2081_v41, %v2249_v23  ;;  %v263_v31 = vmul.f32 %v2084_v42, %v2249_v23 }
  0x83   :  { %v102_v28 = vmul.f32 %v2060_v33, %v2297_v14  ;;  %v103_v45 = vmul.f32 %v2063_v34, %v2297_v14  ;;  %v104_v4 = vmul.f32 %v2072_v38, %v2297_v14  ;;  %v105_v5 = vmul.f32 %v2075_v39, %v2297_v14 }
  0x84   :  { %v106_v16 = vmul.f32 %v2078_v40, %v2297_v14  ;;  %v142_v63 = vmul.f32 %v2081_v41, %v2299_v7  ;;  %v143_v62 = vmul.f32 %v2084_v42, %v2299_v7  ;;  %v144_v33 = vmul.f32 %v2087_v43, %v2299_v7 }
  0x85   :  { %v107_v61 = vadd.f32 %v102_v28, %v67_v25  ;;  %v108_v34 = vadd.f32 %v103_v45, %v68_v15  ;;  %v109_v57 = vadd.f32 %v104_v4, %v69_v6  ;;  %v110_v56 = vadd.f32 %v105_v5, %v70_v17 }
  0x86   :  { %v111_v38 = vadd.f32 %v106_v16, %v71_v12  ;;  %v145_v39 = vmul.f32 %v2090_v44, %v2299_v7  ;;  %v146_v40 = vmul.f32 %v2099_v48, %v2299_v7  ;;  %v180_v51 = vadd.f32 %v175_v13, %v2251_v27 }
  0x87   :  { %v147_v47 = vadd.f32 %v142_v63, %v107_v61  ;;  %v148_v46 = vadd.f32 %v143_v62, %v108_v34  ;;  %v149_v37 = vadd.f32 %v144_v33, %v109_v57  ;;  %v181_v36 = vadd.f32 %v176_v19, %v2251_v27 }
  0x88   :  { %v150_v35 = vadd.f32 %v145_v39, %v110_v56  ;;  %v151_v30 = vadd.f32 %v146_v40, %v111_v38  ;;  %v182_v15 = vmul.f32 %v2081_v41, %v2297_v14  ;;  %v183_v17 = vmul.f32 %v2084_v42, %v2297_v14 }
  0x89   :  { %v2333_v4 = vmax.f32 %v147_v47, 0.0  ;;  %v2335_v25 = vmax.f32 %v148_v46, 0.0  ;;  %v2337_v6 = vmax.f32 %v149_v37, 0.0  ;;  %v184_v61 = vmul.f32 %v2087_v43, %v2297_v14 }
  0x8a   :  { %v2341_v57 = vmax.f32 %v150_v35, 0.0  ;;  %v2343_v19 = vmax.f32 %v151_v30, 0.0  ;;  %v185_v56 = vmul.f32 %v2090_v44, %v2297_v14  ;;  %v186_v41 = vmul.f32 %v2099_v48, %v2297_v14 }
  0x8b   :  { %v187_v42 = vadd.f32 %v182_v15, %v177_v11  ;;  %v188_v47 = vadd.f32 %v183_v17, %v178_v32  ;;  %v189_v62 = vadd.f32 %v184_v61, %v179_v26  ;;  %v222_v37 = vmul.f32 %v2102_v49, %v2299_v7 }
  0x8c   :  { %v190_v46 = vadd.f32 %v185_v56, %v180_v51  ;;  %v191_v63 = vadd.f32 %v186_v41, %v181_v36  ;;  %v223_v35 = vmul.f32 %v2105_v50, %v2299_v7  ;;  %v224_v30 = vmul.f32 %v2108_v52, %v2299_v7 }
  0x8d   :  { %v225_v12 = vmul.f32 %v2111_v53, %v2299_v7  ;;  %v226_v13 = vmul.f32 %v2114_v54, %v2299_v7  ;;  %v227_v11 = vadd.f32 %v222_v37, %v187_v42  ;;  %v264_v32 = vmul.f32 %v2087_v43, %v2249_v23 }
  0x8e   :  { %v228_v26 = vadd.f32 %v223_v35, %v188_v47  ;;  %v229_v28 = vadd.f32 %v224_v30, %v189_v62  ;;  %v265_v36 = vmul.f32 %v2090_v44, %v2249_v23  ;;  %v266_v51 = vmul.f32 %v2099_v48, %v2249_v23 }
  0x8f   :  { %v230_v45 = vadd.f32 %v225_v12, %v190_v46  ;;  %v231_v5 = vadd.f32 %v226_v13, %v191_v63  ;;  %v2365_v16 = vmax.f32 %v227_v11, 0.0  ;;  %v267_v33 = vadd.f32 %v262_v18, %v2251_v27 }
  0x90   :  { %v2368_v34 = vmax.f32 %v228_v26, 0.0  ;;  %v2370_v38 = vmax.f32 %v229_v28, 0.0  ;;  %v268_v43 = vadd.f32 %v263_v31, %v2251_v27  ;;  %v269_v39 = vadd.f32 %v264_v32, %v2251_v27 }
  0x91   :  { %v2374_v40 = vmax.f32 %v230_v45, 0.0  ;;  %v2376_v44 = vmax.f32 %v231_v5, 0.0  ;;  %v237_v48 = vadd.f32 %v2365_v16, %v2333_v4  ;;  %v270_v15 = vadd.f32 %v265_v36, %v2251_v27 }
  0x92   :  { %v238_v18 = vadd.f32 %v2368_v34, %v2335_v25  ;;  %v239_v17 = vadd.f32 %v2370_v38, %v2337_v6  ;;  %v271_v61 = vadd.f32 %v266_v51, %v2251_v27  ;;  %v272_v31 = vmul.f32 %v2102_v49, %v2297_v14 }
  0x93   :  { %v240_v56 = vadd.f32 %v2374_v40, %v2341_v57  ;;  %v241_v41 = vadd.f32 %v2376_v44, %v2343_v19  ;;  %v273_v42 = vmul.f32 %v2105_v50, %v2297_v14  ;;  %v274_v47 = vmul.f32 %v2108_v52, %v2297_v14 }
  0x94   :  { %v275_v62 = vmul.f32 %v2111_v53, %v2297_v14  ;;  %v276_v37 = vmul.f32 %v2114_v54, %v2297_v14  ;;  %v277_v46 = vadd.f32 %v272_v31, %v267_v33  ;;  %v312_v63 = vmul.f32 %v2117_v55, %v2299_v7 }
  0x95   :  { %v278_v35 = vadd.f32 %v273_v42, %v268_v43  ;;  %v279_v30 = vadd.f32 %v274_v47, %v269_v39  ;;  %v313_v12 = vmul.f32 %v2126_v58, %v2299_v7  ;;  %v314_v13 = vmul.f32 %v2129_v59, %v2299_v7 }
  0x96   :  { %v280_v11 = vadd.f32 %v275_v62, %v270_v15  ;;  %v281_v32 = vadd.f32 %v276_v37, %v271_v61  ;;  %v315_v26 = vmul.f32 %v2132_v60, %v2299_v7  ;;  %v316_v28 = vmul.f32 %v2141_v0, %v2299_v7 }
  0x97   :  { %v317_v36 = vadd.f32 %v312_v63, %v277_v46  ;;  %v318_v51 = vadd.f32 %v313_v12, %v278_v35  ;;  %v319_v45 = vadd.f32 %v314_v13, %v279_v30  ;;  %v352_v5 = vmul.f32 %v2102_v49, %v2249_v23 }
  0x98   :  { %v320_v33 = vadd.f32 %v315_v26, %v280_v11  ;;  %v321_v43 = vadd.f32 %v316_v28, %v281_v32  ;;  %v353_v39 = vmul.f32 %v2105_v50, %v2249_v23  ;;  %v354_v15 = vmul.f32 %v2108_v52, %v2249_v23 }
  0x99   :  { %v2416_v61 = vmax.f32 %v317_v36, 0.0  ;;  %v2418_v31 = vmax.f32 %v318_v51, 0.0  ;;  %v2420_v42 = vmax.f32 %v319_v45, 0.0  ;;  %v355_v47 = vmul.f32 %v2111_v53, %v2249_v23 }
  0x9a   :  { %v2424_v62 = vmax.f32 %v320_v33, 0.0  ;;  %v2426_v49 = vmax.f32 %v321_v43, 0.0  ;;  %v356_v37 = vmul.f32 %v2114_v54, %v2249_v23  ;;  %v357_v50 = vadd.f32 %v352_v5, %v2251_v27 }
  0x9b   :  { %3550 = vst [vmem:[#allocation31_spill] sm:$0xff] %v2418_v31  ;;  %3551 = vst [vmem:[#allocation32_spill] sm:$0xff] %v2420_v42  ;;  %v327_v52 = vadd.f32 %v2416_v61, %v237_v48  ;;  %v328_v46 = vadd.f32 %v2418_v31, %v238_v18  ;;  %v329_v63 = vadd.f32 %v2420_v42, %v239_v17 }
  0x9c   :  { %3552 = vst [vmem:[#allocation33_spill] sm:$0xff] %v2424_v62  ;;  %3553 = vst [vmem:[#allocation34_spill] sm:$0xff] %v2426_v49  ;;  %v358_v35 = vadd.f32 %v353_v39, %v2251_v27  ;;  %v330_v30 = vadd.f32 %v2424_v62, %v240_v56  ;;  %v331_v53 = vadd.f32 %v2426_v49, %v241_v41 }
  0x9d   :  { %v359_v12 = vadd.f32 %v354_v15, %v2251_v27  ;;  %v360_v13 = vadd.f32 %v355_v47, %v2251_v27  ;;  %v361_v54 = vadd.f32 %v356_v37, %v2251_v27  ;;  %v362_v11 = vmul.f32 %v2117_v55, %v2297_v14 }
  0x9e   :  { %v363_v48 = vmul.f32 %v2126_v58, %v2297_v14  ;;  %v364_v18 = vmul.f32 %v2129_v59, %v2297_v14  ;;  %v365_v17 = vmul.f32 %v2132_v60, %v2297_v14  ;;  %v366_v56 = vmul.f32 %v2141_v0, %v2297_v14 }
  0x9f   :  { %v402_v41 = vmul.f32 %v2144_v1, %v2299_v7  ;;  %v403_v32 = vmul.f32 %v2147_v2, %v2299_v7  ;;  %v367_v26 = vadd.f32 %v362_v11, %v357_v50  ;;  %v404_v51 = vmul.f32 %v2150_v3, %v2299_v7 }
  0xa0   :  { %v368_v28 = vadd.f32 %v363_v48, %v358_v35  ;;  %v369_v36 = vadd.f32 %v364_v18, %v359_v12  ;;  %v370_v45 = vadd.f32 %v365_v17, %v360_v13  ;;  %v371_v5 = vadd.f32 %v366_v56, %v361_v54 }
  0xa1   :  { %v405_v33 = vmul.f32 %v2159_v8, %v2299_v7  ;;  %v406_v43 = vmul.f32 %v2162_v9, %v2299_v7  ;;  %v407_v39 = vadd.f32 %v402_v41, %v367_v26  ;;  %v442_v37 = vmul.f32 %v2117_v55, %v2249_v23 }
  0xa2   :  { %v408_v15 = vadd.f32 %v403_v32, %v368_v28  ;;  %v409_v47 = vadd.f32 %v404_v51, %v369_v36  ;;  %v443_v12 = vmul.f32 %v2126_v58, %v2249_v23  ;;  %v444_v13 = vmul.f32 %v2129_v59, %v2249_v23 }
  0xa3   :  { %v410_v50 = vadd.f32 %v405_v33, %v370_v45  ;;  %v411_v35 = vadd.f32 %v406_v43, %v371_v5  ;;  %v2466_v54 = vmax.f32 %v407_v39, 0.0  ;;  %v445_v18 = vmul.f32 %v2132_v60, %v2249_v23 }
  0xa4   :  { %v2468_v11 = vmax.f32 %v408_v15, 0.0  ;;  %v2470_v48 = vmax.f32 %v409_v47, 0.0  ;;  %v446_v56 = vmul.f32 %v2141_v0, %v2249_v23  ;;  %v447_v58 = vadd.f32 %v442_v37, %v2251_v27 }
  0xa5   :  { %3554 = vst [vmem:[#allocation35_spill] sm:$0xff] %v2466_v54  ;;  %v2474_v17 = vmax.f32 %v410_v50, 0.0  ;;  %v2476_v55 = vmax.f32 %v411_v35, 0.0  ;;  %v347_v59 = vmin.f32 %v2466_v54, %v2416_v61  ;;  %v342_v41 = vmax.f32 %v2466_v54, %v2416_v61 }
  0xa6   :  { %3555 = vst [vmem:[#allocation36_spill] sm:$0xff] %v2468_v11  ;;  %3556 = vst [vmem:[#allocation37_spill] sm:$0xff] %v2470_v48  ;;  %v348_v32 = vmin.f32 %v2468_v11, %v2418_v31  ;;  %v343_v60 = vmax.f32 %v2468_v11, %v2418_v31  ;;  %v349_v26 = vmin.f32 %v2470_v48, %v2420_v42 }
  0xa7   :  { %3557 = vst [vmem:[#allocation38_spill] sm:$0xff] %v2474_v17  ;;  %3558 = vst [vmem:[#allocation39_spill] sm:$0xff] %v2476_v55  ;;  %v344_v0 = vmax.f32 %v2470_v48, %v2420_v42  ;;  %v350_v28 = vmin.f32 %v2474_v17, %v2424_v62  ;;  %v345_v36 = vmax.f32 %v2474_v17, %v2424_v62 }
  0xa8   :  { %v351_v51 = vmin.f32 %v2476_v55, %v2426_v49  ;;  %v346_v45 = vmax.f32 %v2476_v55, %v2426_v49  ;;  %v417_v5 = vadd.f32 %v2466_v54, %v327_v52  ;;  %v418_v33 = vadd.f32 %v2468_v11, %v328_v46 }
  0xa9   :  { %v419_v43 = vadd.f32 %v2470_v48, %v329_v63  ;;  %v420_v39 = vadd.f32 %v2474_v17, %v330_v30  ;;  %v421_v15 = vadd.f32 %v2476_v55, %v331_v53  ;;  %v448_v47 = vadd.f32 %v443_v12, %v2251_v27 }
  0xaa   :  { %v449_v37 = vadd.f32 %v444_v13, %v2251_v27  ;;  %v450_v50 = vadd.f32 %v445_v18, %v2251_v27  ;;  %v451_v35 = vadd.f32 %v446_v56, %v2251_v27  ;;  %v452_v49 = vmul.f32 %v2144_v1, %v2297_v14 }
  0xab   :  { %v453_v52 = vmul.f32 %v2147_v2, %v2297_v14  ;;  %v454_v46 = vmul.f32 %v2150_v3, %v2297_v14  ;;  %v455_v63 = vmul.f32 %v2159_v8, %v2297_v14  ;;  %v456_v30 = vmul.f32 %v2162_v9, %v2297_v14 }
  0xac   :  { %v457_v53 = vadd.f32 %v452_v49, %v447_v58  ;;  %v492_v12 = vmul.f32 %v2165_v10, %v2299_v7  ;;  %v493_v13 = vmul.f32 %v2174_v20, %v2299_v7  ;;  %v494_v18 = vmul.f32 %v2177_v21, %v2299_v7 }
  0xad   :  { %v458_v56 = vadd.f32 %v453_v52, %v448_v47  ;;  %v459_v55 = vadd.f32 %v454_v46, %v449_v37  ;;  %v460_v17 = vadd.f32 %v455_v63, %v450_v50  ;;  %v461_v48 = vadd.f32 %v456_v30, %v451_v35 }
  0xae   :  { %v495_v11 = vmul.f32 %v2180_v22, %v2299_v7  ;;  %v496_v54 = vmul.f32 %v2183_v24, %v2299_v7  ;;  %v497_v49 = vadd.f32 %v492_v12, %v457_v53  ;;  %v532_v58 = vmul.f32 %v2144_v1, %v2249_v23 }
  0xaf   :  { %v498_v62 = vadd.f32 %v493_v13, %v458_v56  ;;  %v499_v42 = vadd.f32 %v494_v18, %v459_v55  ;;  %v533_v31 = vmul.f32 %v2147_v2, %v2249_v23  ;;  %v534_v47 = vmul.f32 %v2150_v3, %v2249_v23 }
  0xb0   :  { %v500_v37 = vadd.f32 %v495_v11, %v460_v17  ;;  %v501_v50 = vadd.f32 %v496_v54, %v461_v48  ;;  %v2536_v35 = vmax.f32 %v497_v49, 0.0  ;;  %v535_v52 = vmul.f32 %v2159_v8, %v2249_v23  ;;  %v3565_v49 = vld [vmem:[#allocation12_spill] sm:$0xff] }
  0xb1   :  { %v2540_v46 = vmax.f32 %v498_v62, 0.0  ;;  %v2542_v63 = vmax.f32 %v499_v42, 0.0  ;;  %v536_v1 = vmul.f32 %v2162_v9, %v2249_v23  ;;  %v537_v55 = vadd.f32 %v532_v58, %v2251_v27 }
  0xb2   :  { %3559 = vst [vmem:[#allocation40_spill] sm:$0xff] %v2536_v35  ;;  %v2548_v2 = vmin.f32 %v347_v59, %v2536_v35  ;;  %v2551_v3 = vmax.f32 %v342_v41, %v2536_v35  ;;  %v2553_v54 = vmax.f32 %v500_v37, 0.0  ;;  %v2555_v11 = vmax.f32 %v501_v50, 0.0  ;;  %v3566_v50 = vld [vmem:[#allocation13_spill] sm:$0xff] }
  0xb3   :  { %3560 = vst [vmem:[#allocation41_spill] sm:$0xff] %v2540_v46  ;;  %3561 = vst [vmem:[#allocation42_spill] sm:$0xff] %v2542_v63  ;;  %v2558_v8 = vmin.f32 %v348_v32, %v2540_v46  ;;  %v2561_v42 = vmax.f32 %v343_v60, %v2540_v46  ;;  %v2564_v9 = vmin.f32 %v349_v26, %v2542_v63 }
  0xb4   :  { %3562 = vst [vmem:[#allocation43_spill] sm:$0xff] %v2553_v54  ;;  %3563 = vst [vmem:[#allocation44_spill] sm:$0xff] %v2555_v11  ;;  %v2567_v62 = vmax.f32 %v344_v0, %v2542_v63  ;;  %v2570_v48 = vmin.f32 %v350_v28, %v2553_v54  ;;  %v2573_v17 = vmax.f32 %v345_v36, %v2553_v54 }
  0xb5   :  { %v2576_v59 = vmin.f32 %v351_v51, %v2555_v11  ;;  %v2579_v41 = vmax.f32 %v346_v45, %v2555_v11  ;;  %v507_v32 = vadd.f32 %v2536_v35, %v417_v5  ;;  %v508_v60 = vadd.f32 %v2540_v46, %v418_v33 }
  0xb6   :  { %v509_v26 = vadd.f32 %v2542_v63, %v419_v43  ;;  %v510_v0 = vadd.f32 %v2553_v54, %v420_v39  ;;  %v511_v28 = vadd.f32 %v2555_v11, %v421_v15  ;;  %v538_v30 = vadd.f32 %v533_v31, %v2251_v27  ;;  %v3564_v15 = vld [vmem:[#allocation11_spill] sm:$0xff] }
  0xb7   :  { %v539_v36 = vadd.f32 %v534_v47, %v2251_v27  ;;  %v540_v51 = vadd.f32 %v535_v52, %v2251_v27  ;;  %v541_v53 = vadd.f32 %v536_v1, %v2251_v27  ;;  %v542_v45 = vmul.f32 %v2165_v10, %v2297_v14  ;;  %v3567_v1 = vld [vmem:[#allocation14_spill] sm:$0xff] }
  0xb8   :  { %v543_v5 = vmul.f32 %v2174_v20, %v2297_v14  ;;  %v544_v33 = vmul.f32 %v2177_v21, %v2297_v14  ;;  %v545_v43 = vmul.f32 %v2180_v22, %v2297_v14  ;;  %v546_v31 = vmul.f32 %v2183_v24, %v2297_v14 }
  0xb9   :  { %v582_v39 = vmul.f32 %v2186_v29, %v2299_v7  ;;  %v583_v12 = vmul.f32 %v3564_v15, %v2299_v7  ;;  %v547_v13 = vadd.f32 %v542_v45, %v537_v55  ;;  %v584_v58 = vmul.f32 %v3565_v49, %v2299_v7 }
  0xba   :  { %v548_v18 = vadd.f32 %v543_v5, %v538_v30  ;;  %v549_v56 = vadd.f32 %v544_v33, %v539_v36  ;;  %v550_v47 = vadd.f32 %v545_v43, %v540_v51  ;;  %v551_v37 = vadd.f32 %v546_v31, %v541_v53 }
  0xbb   :  { %v585_v52 = vmul.f32 %v3566_v50, %v2299_v7  ;;  %v586_v11 = vmul.f32 %v3567_v1, %v2299_v7  ;;  %v587_v54 = vadd.f32 %v582_v39, %v547_v13  ;;  %v622_v35 = vmul.f32 %v2165_v10, %v2249_v23  ;;  %v3573_v13 = vld [vmem:[#allocation16_spill] sm:$0xff] }
  0xbc   :  { %v588_v63 = vadd.f32 %v583_v12, %v548_v18  ;;  %v589_v46 = vadd.f32 %v584_v58, %v549_v56  ;;  %v623_v36 = vmul.f32 %v2174_v20, %v2249_v23  ;;  %v624_v51 = vmul.f32 %v2177_v21, %v2249_v23  ;;  %v3574_v56 = vld [vmem:[#allocation17_spill] sm:$0xff] }
  0xbd   :  { %v590_v55 = vadd.f32 %v585_v52, %v550_v47  ;;  %v591_v30 = vadd.f32 %v586_v11, %v551_v37  ;;  %v2616_v53 = vmax.f32 %v587_v54, 0.0  ;;  %v625_v33 = vmul.f32 %v2180_v22, %v2249_v23  ;;  %v3575_v47 = vld [vmem:[#allocation18_spill] sm:$0xff] }
  0xbe   :  { %v2618_v45 = vmax.f32 %v588_v63, 0.0  ;;  %v2620_v5 = vmax.f32 %v589_v46, 0.0  ;;  %v626_v11 = vmul.f32 %v2183_v24, %v2249_v23  ;;  %v627_v20 = vadd.f32 %v622_v35, %v2251_v27 }
  0xbf   :  { %3568 = vst [vmem:[#allocation11_spill] sm:$0xff] %v2616_v53  ;;  %v2624_v43 = vmax.f32 %v590_v55, 0.0  ;;  %v2626_v10 = vmax.f32 %v591_v30, 0.0  ;;  %v527_v21 = vmin.f32 %v2548_v2, %v2616_v53  ;;  %v522_v63 = vmax.f32 %v2551_v3, %v2616_v53 }
  0xc0   :  { %3569 = vst [vmem:[#allocation12_spill] sm:$0xff] %v2618_v45  ;;  %3570 = vst [vmem:[#allocation13_spill] sm:$0xff] %v2620_v5  ;;  %v528_v46 = vmin.f32 %v2558_v8, %v2618_v45  ;;  %v523_v22 = vmax.f32 %v2561_v42, %v2618_v45  ;;  %v529_v54 = vmin.f32 %v2564_v9, %v2620_v5 }
  0xc1   :  { %3571 = vst [vmem:[#allocation14_spill] sm:$0xff] %v2624_v43  ;;  %3572 = vst [vmem:[#allocation45_spill] sm:$0xff] %v2626_v10  ;;  %v524_v24 = vmax.f32 %v2567_v62, %v2620_v5  ;;  %v530_v35 = vmin.f32 %v2570_v48, %v2624_v43  ;;  %v525_v2 = vmax.f32 %v2573_v17, %v2624_v43 }
  0xc2   :  { %v531_v3 = vmin.f32 %v2576_v59, %v2626_v10  ;;  %v526_v8 = vmax.f32 %v2579_v41, %v2626_v10  ;;  %v597_v42 = vadd.f32 %v2616_v53, %v507_v32  ;;  %v598_v31 = vadd.f32 %v2618_v45, %v508_v60 }
  0xc3   :  { %v599_v9 = vadd.f32 %v2620_v5, %v509_v26  ;;  %v600_v62 = vadd.f32 %v2624_v43, %v510_v0  ;;  %v601_v39 = vadd.f32 %v2626_v10, %v511_v28  ;;  %v628_v48 = vadd.f32 %v623_v36, %v2251_v27 }
  0xc4   :  { %v629_v17 = vadd.f32 %v624_v51, %v2251_v27  ;;  %v630_v12 = vadd.f32 %v625_v33, %v2251_v27  ;;  %v631_v59 = vadd.f32 %v626_v11, %v2251_v27  ;;  %v632_v41 = vmul.f32 %v2186_v29, %v2297_v14  ;;  %v3576_v51 = vld [vmem:[#allocation19_spill] sm:$0xff]  ;;  %v3577_v11 = vld [vmem:[#allocation20_spill] sm:$0xff] }
  0xc5   :  { %v633_v32 = vmul.f32 %v3564_v15, %v2297_v14  ;;  %v634_v60 = vmul.f32 %v3565_v49, %v2297_v14  ;;  %v635_v26 = vmul.f32 %v3566_v50, %v2297_v14  ;;  %v636_v0 = vmul.f32 %v3567_v1, %v2297_v14 }
  0xc6   :  { %v637_v28 = vadd.f32 %v632_v41, %v627_v20  ;;  %v672_v18 = vmul.f32 %v3573_v13, %v2299_v7  ;;  %v673_v58 = vmul.f32 %v3574_v56, %v2299_v7  ;;  %v674_v37 = vmul.f32 %v3575_v47, %v2299_v7 }
  0xc7   :  { %v638_v52 = vadd.f32 %v633_v32, %v628_v48  ;;  %v639_v55 = vadd.f32 %v634_v60, %v629_v17  ;;  %v640_v30 = vadd.f32 %v635_v26, %v630_v12  ;;  %v641_v36 = vadd.f32 %v636_v0, %v631_v59 }
  0xc8   :  { %v675_v33 = vmul.f32 %v3576_v51, %v2299_v7  ;;  %v676_v10 = vmul.f32 %v3577_v11, %v2299_v7  ;;  %v677_v20 = vadd.f32 %v672_v18, %v637_v28  ;;  %v712_v41 = vmul.f32 %v2186_v29, %v2249_v23 }
  0xc9   :  { %v678_v43 = vadd.f32 %v673_v58, %v638_v52  ;;  %v679_v5 = vadd.f32 %v674_v37, %v639_v55  ;;  %v713_v45 = vmul.f32 %v3564_v15, %v2249_v23  ;;  %v714_v48 = vmul.f32 %v3565_v49, %v2249_v23  ;;  %v3584_v55 = vld [vmem:[#allocation22_spill] sm:$0xff] }
  0xca   :  { %v680_v17 = vadd.f32 %v675_v33, %v640_v30  ;;  %v681_v12 = vadd.f32 %v676_v10, %v641_v36  ;;  %v2686_v59 = vmax.f32 %v677_v20, 0.0  ;;  %v715_v32 = vmul.f32 %v3566_v50, %v2249_v23 }
  0xcb   :  { %v2690_v60 = vmax.f32 %v678_v43, 0.0  ;;  %v2692_v26 = vmax.f32 %v679_v5, 0.0  ;;  %v716_v29 = vmul.f32 %v3567_v1, %v2249_v23  ;;  %v717_v0 = vadd.f32 %v712_v41, %v2251_v27  ;;  %v3585_v41 = vld [vmem:[#allocation23_spill] sm:$0xff] }
  0xcc   :  { %3578 = vst [vmem:[#allocation16_spill] sm:$0xff] %v2686_v59  ;;  %v2698_v15 = vmin.f32 %v527_v21, %v2686_v59  ;;  %v2701_v49 = vmax.f32 %v522_v63, %v2686_v59  ;;  %v2703_v10 = vmax.f32 %v680_v17, 0.0  ;;  %v2705_v28 = vmax.f32 %v681_v12, 0.0 }
  0xcd   :  { %3579 = vst [vmem:[#allocation17_spill] sm:$0xff] %v2690_v60  ;;  %3580 = vst [vmem:[#allocation18_spill] sm:$0xff] %v2692_v26  ;;  %v2708_v50 = vmin.f32 %v528_v46, %v2690_v60  ;;  %v2711_v5 = vmax.f32 %v523_v22, %v2690_v60  ;;  %v2714_v1 = vmin.f32 %v529_v54, %v2692_v26 }
  0xce   :  { %3581 = vst [vmem:[#allocation19_spill] sm:$0xff] %v2703_v10  ;;  %3582 = vst [vmem:[#allocation20_spill] sm:$0xff] %v2705_v28  ;;  %v2717_v43 = vmax.f32 %v524_v24, %v2692_v26  ;;  %v2720_v21 = vmin.f32 %v530_v35, %v2703_v10  ;;  %v2723_v63 = vmax.f32 %v525_v2, %v2703_v10 }
  0xcf   :  { %v2726_v18 = vmin.f32 %v531_v3, %v2705_v28  ;;  %v2729_v46 = vmax.f32 %v526_v8, %v2705_v28  ;;  %v687_v22 = vadd.f32 %v2686_v59, %v597_v42  ;;  %v688_v54 = vadd.f32 %v2690_v60, %v598_v31 }
  0xd0   :  { %v689_v58 = vadd.f32 %v2692_v26, %v599_v9  ;;  %v690_v24 = vadd.f32 %v2703_v10, %v600_v62  ;;  %v691_v35 = vadd.f32 %v2705_v28, %v601_v39  ;;  %v718_v37 = vadd.f32 %v713_v45, %v2251_v27  ;;  %v3583_v62 = vld [vmem:[#allocation21_spill] sm:$0xff] }
  0xd1   :  { %v719_v2 = vadd.f32 %v714_v48, %v2251_v27  ;;  %v720_v3 = vadd.f32 %v715_v32, %v2251_v27  ;;  %v721_v52 = vadd.f32 %v716_v29, %v2251_v27  ;;  %v722_v8 = vmul.f32 %v3573_v13, %v2297_v14  ;;  %v3586_v32 = vld [vmem:[#allocation24_spill] sm:$0xff]  ;;  %v3587_v28 = vld [vmem:[#allocation25_spill] sm:$0xff] }
  0xd2   :  { %v723_v42 = vmul.f32 %v3574_v56, %v2297_v14  ;;  %v724_v31 = vmul.f32 %v3575_v47, %v2297_v14  ;;  %v725_v9 = vmul.f32 %v3576_v51, %v2297_v14  ;;  %v726_v45 = vmul.f32 %v3577_v11, %v2297_v14 }
  0xd3   :  { %v762_v39 = vmul.f32 %v3583_v62, %v2299_v7  ;;  %v763_v30 = vmul.f32 %v3584_v55, %v2299_v7  ;;  %v727_v36 = vadd.f32 %v722_v8, %v717_v0  ;;  %v764_v48 = vmul.f32 %v3585_v41, %v2299_v7 }
  0xd4   :  { %v728_v33 = vadd.f32 %v723_v42, %v718_v37  ;;  %v729_v20 = vadd.f32 %v724_v31, %v719_v2  ;;  %v730_v17 = vadd.f32 %v725_v9, %v720_v3  ;;  %v731_v12 = vadd.f32 %v726_v45, %v721_v52 }
  0xd5   :  { %v765_v29 = vmul.f32 %v3586_v32, %v2299_v7  ;;  %v766_v10 = vmul.f32 %v3587_v28, %v2299_v7  ;;  %v767_v26 = vadd.f32 %v762_v39, %v727_v36  ;;  %v802_v53 = vmul.f32 %v3573_v13, %v2249_v23  ;;  %v3592_v36 = vld [vmem:[#allocation26_spill] sm:$0xff] }
  0xd6   :  { %v768_v60 = vadd.f32 %v763_v30, %v728_v33  ;;  %v769_v59 = vadd.f32 %v764_v48, %v729_v20  ;;  %v803_v2 = vmul.f32 %v3574_v56, %v2249_v23  ;;  %v804_v3 = vmul.f32 %v3575_v47, %v2249_v23  ;;  %v3593_v20 = vld [vmem:[#allocation27_spill] sm:$0xff] }
  0xd7   :  { %v770_v0 = vadd.f32 %v765_v29, %v730_v17  ;;  %v771_v37 = vadd.f32 %v766_v10, %v731_v12  ;;  %v2766_v52 = vmax.f32 %v767_v26, 0.0  ;;  %v805_v31 = vmul.f32 %v3576_v51, %v2249_v23  ;;  %v3594_v17 = vld [vmem:[#allocation28_spill] sm:$0xff] }
  0xd8   :  { %v2768_v8 = vmax.f32 %v768_v60, 0.0  ;;  %v2770_v42 = vmax.f32 %v769_v59, 0.0  ;;  %v806_v10 = vmul.f32 %v3577_v11, %v2249_v23  ;;  %v807_v56 = vadd.f32 %v802_v53, %v2251_v27 }
  0xd9   :  { %v2774_v9 = vmax.f32 %v770_v0, 0.0  ;;  %v2776_v13 = vmax.f32 %v771_v37, 0.0  ;;  %v707_v47 = vmin.f32 %v2698_v15, %v2766_v52  ;;  %v702_v60 = vmax.f32 %v2701_v49, %v2766_v52 }
  0xda   :  { %3588 = vst [vmem:[#allocation21_spill] sm:$0xff] %v2768_v8  ;;  %3589 = vst [vmem:[#allocation22_spill] sm:$0xff] %v2770_v42  ;;  %v708_v59 = vmin.f32 %v2708_v50, %v2768_v8  ;;  %v703_v51 = vmax.f32 %v2711_v5, %v2768_v8  ;;  %v709_v26 = vmin.f32 %v2714_v1, %v2770_v42 }
  0xdb   :  { %3590 = vst [vmem:[#allocation23_spill] sm:$0xff] %v2774_v9  ;;  %3591 = vst [vmem:[#allocation24_spill] sm:$0xff] %v2776_v13  ;;  %v704_v11 = vmax.f32 %v2717_v43, %v2770_v42  ;;  %v710_v53 = vmin.f32 %v2720_v21, %v2774_v9  ;;  %v705_v15 = vmax.f32 %v2723_v63, %v2774_v9 }
  0xdc   :  { %v711_v49 = vmin.f32 %v2726_v18, %v2776_v13  ;;  %v706_v50 = vmax.f32 %v2729_v46, %v2776_v13  ;;  %v777_v5 = vadd.f32 %v2766_v52, %v687_v22  ;;  %v778_v45 = vadd.f32 %v2768_v8, %v688_v54 }
  0xdd   :  { %v779_v1 = vadd.f32 %v2770_v42, %v689_v58  ;;  %v780_v43 = vadd.f32 %v2774_v9, %v690_v24  ;;  %v781_v39 = vadd.f32 %v2776_v13, %v691_v35  ;;  %v808_v21 = vadd.f32 %v803_v2, %v2251_v27 }
  0xde   :  { %v809_v63 = vadd.f32 %v804_v3, %v2251_v27  ;;  %v810_v30 = vadd.f32 %v805_v31, %v2251_v27  ;;  %v811_v18 = vadd.f32 %v806_v10, %v2251_v27  ;;  %v812_v46 = vmul.f32 %v3583_v62, %v2297_v14  ;;  %v3595_v3 = vld [vmem:[#allocation29_spill] sm:$0xff]  ;;  %v3596_v10 = vld [vmem:[#allocation30_spill] sm:$0xff] }
  0xdf   :  { %v813_v22 = vmul.f32 %v3584_v55, %v2297_v14  ;;  %v814_v54 = vmul.f32 %v3585_v41, %v2297_v14  ;;  %v815_v58 = vmul.f32 %v3586_v32, %v2297_v14  ;;  %v816_v24 = vmul.f32 %v3587_v28, %v2297_v14 }
  0xe0   :  { %v817_v35 = vadd.f32 %v812_v46, %v807_v56  ;;  %v852_v33 = vmul.f32 %v3592_v36, %v2299_v7  ;;  %v853_v48 = vmul.f32 %v3593_v20, %v2299_v7  ;;  %v854_v12 = vmul.f32 %v3594_v17, %v2299_v7 }
  0xe1   :  { %v818_v29 = vadd.f32 %v813_v22, %v808_v21  ;;  %v819_v0 = vadd.f32 %v814_v54, %v809_v63  ;;  %v820_v37 = vadd.f32 %v815_v58, %v810_v30  ;;  %v821_v2 = vadd.f32 %v816_v24, %v811_v18 }
  0xe2   :  { %v855_v31 = vmul.f32 %v3595_v3, %v2299_v7  ;;  %v856_v13 = vmul.f32 %v3596_v10, %v2299_v7  ;;  %v857_v56 = vadd.f32 %v852_v33, %v817_v35  ;;  %v892_v46 = vmul.f32 %v3583_v62, %v2249_v23 }
  0xe3   :  { %v858_v9 = vadd.f32 %v853_v48, %v818_v29  ;;  %v859_v42 = vadd.f32 %v854_v12, %v819_v0  ;;  %v893_v8 = vmul.f32 %v3584_v55, %v2249_v23  ;;  %v894_v21 = vmul.f32 %v3585_v41, %v2249_v23 }
  0xe4   :  { %v860_v63 = vadd.f32 %v855_v31, %v820_v37  ;;  %v861_v30 = vadd.f32 %v856_v13, %v821_v2  ;;  %v2836_v18 = vmax.f32 %v857_v56, 0.0  ;;  %v895_v22 = vmul.f32 %v3586_v32, %v2249_v23 }
  0xe5   :  { %v2840_v54 = vmax.f32 %v858_v9, 0.0  ;;  %v2842_v58 = vmax.f32 %v859_v42, 0.0  ;;  %v896_v62 = vmul.f32 %v3587_v28, %v2249_v23  ;;  %v897_v24 = vadd.f32 %v892_v46, %v2251_v27  ;;  %v3604_v46 = vld [vmem:[#allocation9_spill] sm:$0xff] }
  0xe6   :  { %v2848_v55 = vmin.f32 %v707_v47, %v2836_v18  ;;  %v2851_v41 = vmax.f32 %v702_v60, %v2836_v18  ;;  %v2853_v13 = vmax.f32 %v860_v63, 0.0  ;;  %v2855_v35 = vmax.f32 %v861_v30, 0.0  ;;  %v3606_v30 = vld [vmem:[#allocation10_spill] sm:$0xff] }
  0xe7   :  { %v2858_v32 = vmin.f32 %v708_v59, %v2840_v54  ;;  %v2861_v42 = vmax.f32 %v703_v51, %v2840_v54  ;;  %v2864_v23 = vmin.f32 %v709_v26, %v2842_v58  ;;  %v2867_v28 = vmax.f32 %v704_v11, %v2842_v58 }
  0xe8   :  { %v2870_v9 = vmin.f32 %v710_v53, %v2853_v13  ;;  %v2873_v47 = vmax.f32 %v705_v15, %v2853_v13  ;;  %v2876_v60 = vmin.f32 %v711_v49, %v2855_v35  ;;  %v2879_v59 = vmax.f32 %v706_v50, %v2855_v35 }
  0xe9   :  { %v867_v51 = vadd.f32 %v2836_v18, %v777_v5  ;;  %v868_v26 = vadd.f32 %v2840_v54, %v778_v45  ;;  %v869_v33 = vadd.f32 %v2842_v58, %v779_v1  ;;  %v870_v11 = vadd.f32 %v2853_v13, %v780_v43  ;;  %v3597_v43 = vld [vmem:[#allocation15_spill] sm:$0xff] }
  0xea   :  { %v871_v53 = vadd.f32 %v2855_v35, %v781_v39  ;;  %v898_v48 = vadd.f32 %v893_v8, %v2251_v27  ;;  %v899_v15 = vadd.f32 %v894_v21, %v2251_v27  ;;  %v900_v49 = vadd.f32 %v895_v22, %v2251_v27  ;;  %v3598_v39 = vld [vmem:[#allocation6_spill] sm:$0xff] }
  0xeb   :  { %v901_v12 = vadd.f32 %v896_v62, %v2251_v27  ;;  %v902_v50 = vmul.f32 %v3592_v36, %v2297_v14  ;;  %v903_v5 = vmul.f32 %v3593_v20, %v2297_v14  ;;  %v904_v45 = vmul.f32 %v3594_v17, %v2297_v14  ;;  %v3600_v36 = vld [vmem:[#allocation7_spill] sm:$0xff] }
  0xec   :  { %v905_v1 = vmul.f32 %v3595_v3, %v2297_v14  ;;  %v906_v8 = vmul.f32 %v3596_v10, %v2297_v14  ;;  %v3599_v29 = vrot.slane %v3597_v43, %v3598_v39  ;;  %v3601_v0 = vrot.slane %v3597_v43, %v3600_v36  ;;  %v3602_v3 = vld [vmem:[#allocation8_spill] sm:$0xff] }
  0xed   :  { %v907_v20 = vadd.f32 %v902_v50, %v897_v24  ;;  %v908_v2 = vadd.f32 %v903_v5, %v898_v48  ;;  %v909_v17 = vadd.f32 %v904_v45, %v899_v15  ;;  %v3603_v31 = vrot.slane %v3597_v43, %v3602_v3 }
  0xee   :  { %v942_v27 = vmul.f32 %v3599_v29, %v2299_v7  ;;  %v943_v37 = vmul.f32 %v3601_v0, %v2299_v7  ;;  %v910_v14 = vadd.f32 %v905_v1, %v900_v49  ;;  %v911_v10 = vadd.f32 %v906_v8, %v901_v12 }
  0xef   :  { %v944_v56 = vmul.f32 %v3603_v31, %v2299_v7  ;;  %v3605_v21 = vrot.slane %v3597_v43, %v3604_v46  ;;  %v3607_v22 = vrot.slane %v3597_v43, %v3606_v30  ;;  %v162_v50 = vmul.f32 %v2333_v4, %v2333_v4  ;;  %v3608_v46 = vld [vmem:[#allocation31_spill] sm:$0xff]  ;;  %v3611_v31 = vld [vmem:[#allocation34_spill] sm:$0xff] }
  0xf0   :  { %v947_v24 = vadd.f32 %v942_v27, %v907_v20  ;;  %v948_v48 = vadd.f32 %v943_v37, %v908_v2  ;;  %v163_v49 = vmul.f32 %v2335_v25, %v2335_v25  ;;  %v164_v12 = vmul.f32 %v2337_v6, %v2337_v6 }
  0xf1   :  { %v945_v63 = vmul.f32 %v3605_v21, %v2299_v7  ;;  %v946_v62 = vmul.f32 %v3607_v22, %v2299_v7  ;;  %v949_v15 = vadd.f32 %v944_v56, %v909_v17  ;;  %v165_v7 = vmul.f32 %v2341_v57, %v2341_v57 }
  0xf2   :  { %v2926_v1 = vmax.f32 %v947_v24, 0.0  ;;  %v2928_v8 = vmax.f32 %v948_v48, 0.0  ;;  %v166_v0 = vmul.f32 %v2343_v19, %v2343_v19  ;;  %v242_v37 = vmul.f32 %v2365_v16, %v2365_v16 }
  0xf3   :  { %v950_v5 = vadd.f32 %v945_v63, %v910_v14  ;;  %v951_v45 = vadd.f32 %v946_v62, %v911_v10  ;;  %v2930_v43 = vmax.f32 %v949_v15, 0.0  ;;  %v243_v15 = vmul.f32 %v2368_v34, %v2368_v34  ;;  %v3610_v14 = vld [vmem:[#allocation33_spill] sm:$0xff] }
  0xf4   :  { %v882_v2 = vmax.f32 %v2851_v41, %v2926_v1  ;;  %v957_v30 = vadd.f32 %v2926_v1, %v867_v51  ;;  %v958_v22 = vadd.f32 %v2928_v8, %v868_v26  ;;  %v244_v21 = vmul.f32 %v2370_v38, %v2370_v38 }
  0xf5   :  { %v2934_v29 = vmax.f32 %v950_v5, 0.0  ;;  %v2936_v27 = vmax.f32 %v951_v45, 0.0  ;;  %v959_v62 = vadd.f32 %v2930_v43, %v869_v33  ;;  %v245_v51 = vmul.f32 %v2374_v40, %v2374_v40 }
  0xf6   :  { %v983_v5 = vsel %vm982_vm0, %v957_v30, 0.0  ;;  %v984_v45 = vsel %vm982_vm0, %v958_v22, 0.0  ;;  %v246_v10 = vmul.f32 %v2376_v44, %v2376_v44  ;;  %v247_v56 = vadd.f32 %v242_v37, %v162_v50 }
  0xf7   :  { %v960_v24 = vadd.f32 %v2934_v29, %v870_v11  ;;  %v961_v48 = vadd.f32 %v2936_v27, %v871_v53  ;;  %v985_v26 = vadd.f32 %v984_v45, %v983_v5  ;;  %v986_v33 = vsel %vm982_vm0, %v959_v62, 0.0  ;;  %v3609_v62 = vld [vmem:[#allocation32_spill] sm:$0xff] }
  0xf8   :  { %v248_v30 = vadd.f32 %v243_v15, %v163_v49  ;;  %v249_v17 = vadd.f32 %v244_v21, %v164_v12  ;;  %v250_v20 = vadd.f32 %v245_v51, %v165_v7  ;;  %v332_v63 = vmul.f32 %v2416_v61, %v2416_v61  ;;  %v3612_v7 = vld [vmem:[#allocation35_spill] sm:$0xff] }
  0xf9   :  { %v988_v11 = vsel %vm982_vm0, %v960_v24, 0.0  ;;  %v991_v53 = vsel %vm990_vm1, %v961_v48, 0.0  ;;  %v987_v22 = vadd.f32 %v986_v33, %v985_v26  ;;  %v333_v5 = vmul.f32 %v3608_v46, %v3608_v46  ;;  %v3613_v46 = vld [vmem:[#allocation36_spill] sm:$0xff]  ;;  %v3614_v26 = vld [vmem:[#allocation37_spill] sm:$0xff] }
  0xfa   :  { %v251_v45 = vadd.f32 %v246_v10, %v166_v0  ;;  %v334_v24 = vmul.f32 %v3609_v62, %v3609_v62  ;;  %v335_v48 = vmul.f32 %v3610_v14, %v3610_v14  ;;  %v336_v50 = vmul.f32 %v3611_v31, %v3611_v31  ;;  %v3615_v14 = vld [vmem:[#allocation38_spill] sm:$0xff]  ;;  %v3616_v31 = vld [vmem:[#allocation39_spill] sm:$0xff] }
  0xfb   :  { %v989_v49 = vadd.f32 %v988_v11, %v987_v22  ;;  %v337_v12 = vadd.f32 %v332_v63, %v247_v56  ;;  %v338_v37 = vadd.f32 %v333_v5, %v248_v30  ;;  %v422_v21 = vmul.f32 %v3612_v7, %v3612_v7  ;;  %v3617_v30 = vld [vmem:[#allocation40_spill] sm:$0xff] }
  0xfc   :  { %v339_v61 = vadd.f32 %v334_v24, %v249_v17  ;;  %v340_v15 = vadd.f32 %v335_v48, %v250_v20  ;;  %v341_v51 = vadd.f32 %v336_v50, %v251_v45  ;;  %v423_v0 = vmul.f32 %v3613_v46, %v3613_v46  ;;  %v3618_v20 = vld [vmem:[#allocation41_spill] sm:$0xff]  ;;  %v3619_v24 = vld [vmem:[#allocation42_spill] sm:$0xff]  ;;  %v3620_v50 = vld [vmem:[#allocation43_spill] sm:$0xff] }
  0xfd   :  { %v992_v10 = vadd.f32 %v991_v53, %v989_v49  ;;  %v424_v33 = vmul.f32 %v3614_v26, %v3614_v26  ;;  %v425_v62 = vmul.f32 %v3615_v14, %v3615_v14  ;;  %v426_v56 = vmul.f32 %v3616_v31, %v3616_v31  ;;  %v3621_v7 = vld [vmem:[#allocation44_spill] sm:$0xff] }
  0xfe   :  { %v427_v63 = vadd.f32 %v422_v21, %v337_v12  ;;  %v428_v11 = vadd.f32 %v423_v0, %v338_v37  ;;  %v512_v17 = vmul.f32 %v3617_v30, %v3617_v30  ;;  %v513_v22 = vmul.f32 %v3618_v20, %v3618_v20  ;;  %v3622_v0 = vld [vmem:[#allocation11_spill] sm:$0xff]  ;;  %v3623_v14 = vld [vmem:[#allocation12_spill] sm:$0xff] }
  0xff   :  { %993 = vadd.xlane.f32.xlu1 %v992_v10  ;;  %v429_v5 = vadd.f32 %v424_v33, %v339_v61  ;;  %v430_v53 = vadd.f32 %v425_v62, %v340_v15  ;;  %v431_v45 = vadd.f32 %v426_v56, %v341_v51  ;;  %v514_v48 = vmul.f32 %v3619_v24, %v3619_v24  ;;  %v3624_v15 = vld [vmem:[#allocation13_spill] sm:$0xff]  ;;  %v3625_v62 = vld [vmem:[#allocation14_spill] sm:$0xff]  ;;  %v3627_v20 = vld [vmem:[#allocation16_spill] sm:$0xff] }
 0x100   :  { %v515_v49 = vmul.f32 %v3620_v50, %v3620_v50  ;;  %v516_v12 = vmul.f32 %v3621_v7, %v3621_v7  ;;  %v517_v37 = vadd.f32 %v512_v17, %v427_v63  ;;  %v518_v21 = vadd.f32 %v513_v22, %v428_v11  ;;  %v3626_v56 = vld [vmem:[#allocation45_spill] sm:$0xff]  ;;  %v3629_v7 = vld [vmem:[#allocation18_spill] sm:$0xff] }
 0x101   :  { %v519_v46 = vadd.f32 %v514_v48, %v429_v5  ;;  %v602_v26 = vmul.f32 %v3622_v0, %v3622_v0  ;;  %v603_v61 = vmul.f32 %v3623_v14, %v3623_v14  ;;  %v604_v51 = vmul.f32 %v3624_v15, %v3624_v15  ;;  %v3628_v48 = vld [vmem:[#allocation17_spill] sm:$0xff]  ;;  %v3633_v15 = vld [vmem:[#allocation22_spill] sm:$0xff] }
 0x102   :  { %v520_v10 = vadd.f32 %v515_v49, %v430_v53  ;;  %v521_v33 = vadd.f32 %v516_v12, %v431_v45  ;;  %v605_v31 = vmul.f32 %v3625_v62, %v3625_v62  ;;  %v606_v30 = vmul.f32 %v3626_v56, %v3626_v56  ;;  %v3630_v45 = vld [vmem:[#allocation19_spill] sm:$0xff]  ;;  %v3631_v12 = vld [vmem:[#allocation20_spill] sm:$0xff]  ;;  %v3632_v14 = vld [vmem:[#allocation21_spill] sm:$0xff] }
 0x103   :  { %v607_v63 = vadd.f32 %v602_v26, %v517_v37  ;;  %v608_v11 = vadd.f32 %v603_v61, %v518_v21  ;;  %v609_v17 = vadd.f32 %v604_v51, %v519_v46  ;;  %v692_v22 = vmul.f32 %v3627_v20, %v3627_v20  ;;  %v3634_v62 = vld [vmem:[#allocation23_spill] sm:$0xff]  ;;  %v3635_v56 = vld [vmem:[#allocation24_spill] sm:$0xff] }
 0x104   :  { %v610_v5 = vadd.f32 %v605_v31, %v520_v10  ;;  %v611_v24 = vadd.f32 %v606_v30, %v521_v33  ;;  %v693_v50 = vmul.f32 %v3628_v48, %v3628_v48  ;;  %v694_v53 = vmul.f32 %v3629_v7, %v3629_v7 }
 0x105   :  { %v695_v49 = vmul.f32 %v3630_v45, %v3630_v45  ;;  %v696_v0 = vmul.f32 %v3631_v12, %v3631_v12  ;;  %v697_v37 = vadd.f32 %v692_v22, %v607_v63  ;;  %v782_v21 = vmul.f32 %v2766_v52, %v2766_v52 }
 0x106   :  { %v698_v46 = vadd.f32 %v693_v50, %v608_v11  ;;  %v699_v26 = vadd.f32 %v694_v53, %v609_v17  ;;  %v783_v61 = vmul.f32 %v3632_v14, %v3632_v14  ;;  %v784_v51 = vmul.f32 %v3633_v15, %v3633_v15 }
 0x107   :  { %v700_v10 = vadd.f32 %v695_v49, %v610_v5  ;;  %v701_v33 = vadd.f32 %v696_v0, %v611_v24  ;;  %v785_v31 = vmul.f32 %v3634_v62, %v3634_v62  ;;  %v786_v30 = vmul.f32 %v3635_v56, %v3635_v56 }
 0x108   :  { %v787_v63 = vadd.f32 %v782_v21, %v697_v37  ;;  %v788_v20 = vadd.f32 %v783_v61, %v698_v46  ;;  %v789_v22 = vadd.f32 %v784_v51, %v699_v26  ;;  %v872_v52 = vmul.f32 %v2836_v18, %v2836_v18 }
 0x109   :  { %v790_v11 = vadd.f32 %v785_v31, %v700_v10  ;;  %v791_v17 = vadd.f32 %v786_v30, %v701_v33  ;;  %v873_v48 = vmul.f32 %v2840_v54, %v2840_v54  ;;  %v874_v5 = vmul.f32 %v2842_v58, %v2842_v58 }
 0x10a   :  { %v875_v24 = vmul.f32 %v2853_v13, %v2853_v13  ;;  %v876_v50 = vmul.f32 %v2855_v35, %v2855_v35  ;;  %v877_v7 = vadd.f32 %v872_v52, %v787_v63  ;;  %v962_v53 = vmul.f32 %v2926_v1, %v2926_v1 }
 0x10b   :  { %v878_v45 = vadd.f32 %v873_v48, %v788_v20  ;;  %v879_v18 = vadd.f32 %v874_v5, %v789_v22  ;;  %v963_v49 = vmul.f32 %v2928_v8, %v2928_v8  ;;  %v964_v54 = vmul.f32 %v2930_v43, %v2930_v43 }
 0x10c   :  { %v880_v12 = vadd.f32 %v875_v24, %v790_v11  ;;  %v881_v58 = vadd.f32 %v876_v50, %v791_v17  ;;  %v965_v13 = vmul.f32 %v2934_v29, %v2934_v29  ;;  %v967_v0 = vadd.f32 %v962_v53, %v877_v7  ;;  %v3068_v7 = vld [vmem:[%s3457_s1] sm:$0x1f] }
 0x10d   :  { %v968_v37 = vadd.f32 %v963_v49, %v878_v45  ;;  %v969_v35 = vadd.f32 %v964_v54, %v879_v18  ;;  %v966_v21 = vmul.f32 %v2936_v27, %v2936_v27  ;;  %v1951_v30 = vmov 4  }
 0x10e   :  { %v970_v46 = vadd.f32 %v965_v13, %v880_v12  ;;  %v996_v26 = vsel %vm982_vm0, %v967_v0, 0.0  ;;  %1902 = vset.pattern.permute.xlu1 %v1951_v30  ;;  %v1952_v63 = vmov 16   ;;  %v1954_v18 = vmov 5  }
 0x10f   :  { %v997_v14 = vsel %vm982_vm0, %v968_v37, 0.0  ;;  %v971_v15 = vadd.f32 %v966_v21, %v881_v58  ;;  %v999_v51 = vsel %vm982_vm0, %v969_v35, 0.0  ;;  %1904 = vset.pattern.permute.xlu0 %v1952_v63  ;;  %v1955_v49 = vmov 20  }
 0x110   :  { %v998_v61 = vadd.f32 %v997_v14, %v996_v26  ;;  %v1001_v33 = vsel %vm982_vm0, %v970_v46, 0.0  ;;  %v1956_v54 = vmov 22   ;;  %v1957_v12 = vmov 24  }
 0x111   :  { %v1003_v31 = vsel %vm990_vm1, %v971_v15, 0.0  ;;  %v252_v0 = vmax.f32 %v2333_v4, %v2365_v16  ;;  %v253_v37 = vmax.f32 %v2335_v25, %v2368_v34  ;;  %v3636_v21 = vmax.f32 %v2861_v42, %v2928_v8 }
 0x112   :  { %v1000_v10 = vadd.f32 %v999_v51, %v998_v61  ;;  %v254_v26 = vmax.f32 %v2337_v6, %v2370_v38  ;;  %v255_v14 = vmax.f32 %v2341_v57, %v2374_v40  ;;  %v256_v61 = vmax.f32 %v2343_v19, %v2376_v44 }
 0x113   :  { %v972_v35 = vmax.f32 %v882_v2, %v252_v0  ;;  %v973_v46 = vmax.f32 %v3636_v21, %v253_v37  ;;  %v257_v15 = vmin.f32 %v2333_v4, %v2365_v16  ;;  %v258_v41 = vmin.f32 %v2335_v25, %v2368_v34 }
 0x114   :  { %v1002_v62 = vadd.f32 %v1001_v33, %v1000_v10  ;;  %v3637_v2 = vmax.f32 %v2867_v28, %v2930_v43  ;;  %v259_v51 = vmin.f32 %v2337_v6, %v2370_v38  ;;  %v260_v10 = vmin.f32 %v2341_v57, %v2374_v40 }
 0x115   :  { %v261_v33 = vmin.f32 %v2343_v19, %v2376_v44  ;;  %v3639_v25 = vmax.f32 %v2879_v59, %v2936_v27  ;;  %v3640_v34 = vmin.f32 %v2848_v55, %v2926_v1  ;;  %v3641_v6 = vmin.f32 %v2858_v32, %v2928_v8 }
 0x116   :  { %v1004_v56 = vadd.f32 %v1003_v31, %v1002_v62  ;;  %v974_v42 = vmax.f32 %v3637_v2, %v254_v26  ;;  %v3638_v62 = vmax.f32 %v2873_v47, %v2934_v29  ;;  %v1958_v40 = vmov 19  }
 0x117   :  { %v976_v16 = vmax.f32 %v3639_v25, %v256_v61  ;;  %v977_v28 = vmin.f32 %v3640_v34, %v257_v15  ;;  %v978_v38 = vmin.f32 %v3641_v6, %v258_v41  ;;  %v3642_v19 = vmin.f32 %v2864_v23, %v2930_v43 }
 0x118   :  { %1005 = vadd.xlane.f32.xlu0 %v1004_v56  ;;  %v975_v4 = vmax.f32 %v3638_v62, %v255_v14  ;;  %v3643_v47 = vmin.f32 %v2870_v9, %v2934_v29  ;;  %v3644_v31 = vmin.f32 %v2876_v60, %v2936_v27  ;;  %v1959_v29 = vmov 17  }
 0x119   :  { %v979_v44 = vmin.f32 %v3642_v19, %v259_v51  ;;  %v1960_v27 = vmov 18   ;;  %v3645_v14 = vlaneseq }
 0x11a   :  { %v980_v59 = vmin.f32 %v3643_v47, %v260_v10  ;;  %v981_v55 = vmin.f32 %v3644_v31, %v261_v33 }
 0x11b   :  { %v3161_v61 = vand.u32 127, %v3645_v14 }
 0x11d   :  { %v3164_v15 = vadd.s32 256, %v3161_v61  ;;  %vm1056_vm3 = vcmp.eq.s32.totalorder %v3161_v61, 0 }
 0x11f   :  { %vm1068_vm4 = vcmp.eq.s32.totalorder %v3164_v15, 300  ;;  %vm1063_vm8 = vcmp.eq.s32.totalorder %v3164_v15, 299 }
 0x188   :  { %v994_v20 = vpop.xlane.xlu1 %993 }
 0x189   :  { %v995_v22 = vmul.f32 0.00016666666, %v994_v20 }
 0x18b   :  { %v1008_v52 = vmul.f32 %v995_v22, %v995_v22 }
 0x1a1   :  { %v1006_v11 = vpop.xlane.xlu0 %1005 }
 0x1a2   :  { %v1007_v17 = vmul.f32 0.00016666666, %v1006_v11 }
 0x1a4   :  { %v1009_v48 = vsub.f32 %v1007_v17, %v1008_v52 }
 0x1a6   :  { %v1010_v5 = vmax.f32 %v1009_v48, 0.0  ;;  %v1961_v48 = vmov 21  }
 0x1a8   :  { %v1011_v24 = vadd.f32 1e-05, %v1010_v5  ;;  %v1962_v5 = vmov 23  }
 0x1aa   :  { %1916 = vrsqrt.f32 %v1011_v24  ;;  %v1963_v24 = vmov 8  }
 0x1b7   :  { %v1917_v50 = vpop.eup %1916 }
 0x1b8   :  { %v1013_v53 = vmul.f32 %v3068_v7, %v1917_v50 }
 0x1ba   :  { %1022 = vperm.xlu1 %1902, %v1013_v53   ;;  %v1014_v45 = vmul.f32 %v1013_v53, %v995_v22 }
 0x1bc   :  { %1016 = vrot.lane.b32.xlu0 %v1014_v45, %s1953_s9 }
 0x1be   :  { %1903 = vset.pattern.permute.xlu1 %v1954_v18 }
 0x1c0   :  { %1165 = vperm.xlu0 %1904, %v3068_v7  }
 0x1c4   :  { %1907 = vset.pattern.permute.xlu0 %v1955_v49 }
 0x1c5   :  { %1246 = vperm.xlu0 %1907, %v3068_v7  }
 0x1c9   :  { %1910 = vset.pattern.permute.xlu0 %v1956_v54  ;;  %v3145_v54 = vld [vmem:[%s3457_s1] sm:$0x7] }
 0x1ca   :  { %1188 = vperm.xlu0 %1910, %v3068_v7  }
 0x1ce   :  { %1912 = vset.pattern.permute.xlu0 %v1957_v12 }
 0x1cf   :  { %1332 = vperm.xlu0 %1912, %v3068_v7  }
 0x22e   :  { %v1017_v58 = vpop.permute.xlu0 %1016 }
 0x22f   :  { %v1019_v13 = vsub.f32 %v3068_v7, %v1017_v58 }
 0x231   :  { %1042 = vperm.xlu1 %1903, %v1019_v13  }
 0x235   :  { %v1023_v57 = vpop.permute.xlu1 %1022  ;;  %1905 = vset.pattern.permute.xlu1 %v1958_v40 }
 0x236   :  { %1174 = vperm.xlu1 %1905, %v3068_v7   ;;  %v1025_v1 = vmul.f32 %v1023_v57, %v972_v35  ;;  %v1026_v32 = vmul.f32 %v1023_v57, %v973_v46  ;;  %v1027_v8 = vmul.f32 %v1023_v57, %v974_v42  ;;  %v1028_v56 = vmul.f32 %v1023_v57, %v975_v4 }
 0x237   :  { %v1029_v30 = vmul.f32 %v1023_v57, %v976_v16  ;;  %v1030_v63 = vmul.f32 %v1023_v57, %v977_v28  ;;  %v1031_v20 = vmul.f32 %v1023_v57, %v978_v38  ;;  %v1032_v22 = vmul.f32 %v1023_v57, %v979_v44 }
 0x238   :  { %v1033_v23 = vmul.f32 %v1023_v57, %v980_v59  ;;  %v1034_v43 = vmul.f32 %v1023_v57, %v981_v55  ;;  %v1055_v16 = vadd.s32 512, %v3161_v61 }
 0x239   :  { %v1035_v52 = vmax.f32 %v1025_v1, %v1030_v63  ;;  %v1036_v11 = vmax.f32 %v1026_v32, %v1031_v20  ;;  %v1037_v9 = vmax.f32 %v1027_v8, %v1032_v22 }
 0x23a   :  { %1906 = vset.pattern.permute.xlu1 %v1959_v29  ;;  %v1038_v17 = vmax.f32 %v1028_v56, %v1033_v23  ;;  %v1039_v60 = vmax.f32 %v1029_v30, %v1034_v43  ;;  %vm1080_vm7 = vcmp.eq.s32.totalorder %v1055_v16, 599 }
 0x23b   :  { %1237 = vperm.xlu1 %1906, %v3068_v7   ;;  %v3148_v58 = vpop.permute.xlu0 %1165 }
 0x23f   :  { %1908 = vset.pattern.permute.xlu1 %v1960_v27 }
 0x240   :  { %1309 = vperm.xlu1 %1908, %v3068_v7   ;;  %v1247_v0 = vpop.permute.xlu0 %1246 }
 0x244   :  { %1909 = vset.pattern.permute.xlu1 %v1961_v48 }
 0x245   :  { %1318 = vperm.xlu1 %1909, %v3068_v7   ;;  %v3154_v35 = vpop.permute.xlu0 %1188 }
 0x249   :  { %1911 = vset.pattern.permute.xlu1 %v1962_v5 }
 0x24a   :  { %1260 = vperm.xlu1 %1911, %v3068_v7   ;;  %v3158_v26 = vpop.permute.xlu0 %1332 }
 0x24e   :  { %1913 = vset.pattern.permute.xlu1 %v1963_v24 }
 0x2ac   :  { %v1043_v50 = vpop.permute.xlu1 %1042 }
 0x2ad   :  { %v1045_v53 = vadd.f32 %v1043_v50, %v1035_v52  ;;  %v1046_v45 = vadd.f32 %v1043_v50, %v1036_v11  ;;  %v1047_v18 = vadd.f32 %v1043_v50, %v1037_v9  ;;  %v1048_v49 = vadd.f32 %v1043_v50, %v1038_v17 }
 0x2ae   :  { %v1049_v7 = vadd.f32 %v1043_v50, %v1039_v60 }
 0x2af   :  { %1127 = vrot.lane.b32.xlu0 %v1045_v53, %s1964_s10  ;;  %1091 = vrot.lane.b32.xlu1 %v1045_v53, %s1953_s9  ;;  %v1249_v51 = vmul.f32 %v1247_v0, %v1045_v53  ;;  %v1251_v10 = vmul.f32 %v1247_v0, %v1047_v18  ;;  %v1250_v62 = vmul.f32 %v1247_v0, %v1046_v45 }
 0x2b0   :  { %v1252_v25 = vmul.f32 %v1247_v0, %v1048_v49  ;;  %v3170_v34 = vmul.f32 %v1247_v0, %v1049_v7 }
 0x2b1   :  { %v1175_v12 = vpop.permute.xlu1 %1174 }
 0x2b2   :  { %v1177_v4 = vmul.f32 %v1175_v12, %v1045_v53  ;;  %v1179_v28 = vmul.f32 %v1175_v12, %v1047_v18  ;;  %v1178_v57 = vmul.f32 %v1175_v12, %v1046_v45  ;;  %v1180_v59 = vmul.f32 %v1175_v12, %v1048_v49 }
 0x2b3   :  { %1131 = vrot.lane.b32.xlu0 %v1047_v18, %s1964_s10  ;;  %1093 = vrot.lane.b32.xlu1 %v1046_v45, %s1953_s9  ;;  %v3178_v31 = vmul.f32 %v1175_v12, %v1049_v7 }
 0x2b6   :  { %v3150_v13 = vpop.permute.xlu1 %1237 }
 0x2b7   :  { %1097 = vrot.lane.b32.xlu0 %v1048_v49, %s1953_s9  ;;  %1095 = vrot.lane.b32.xlu1 %v1047_v18, %s1953_s9 }
 0x2bb   :  { %1135 = vrot.lane.b32.xlu0 %v1049_v7, %s1964_s10  ;;  %1129 = vrot.lane.b32.xlu1 %v1046_v45, %s1964_s10  ;;  %v3152_v37 = vpop.permute.xlu1 %1309 }
 0x2bf   :  { %1133 = vrot.lane.b32.xlu1 %v1048_v49, %s1964_s10 }
 0x2c0   :  { %v1319_v21 = vpop.permute.xlu1 %1318 }
 0x2c1   :  { %v1321_v55 = vmul.f32 %v1319_v21, %v1045_v53  ;;  %v1323_v1 = vmul.f32 %v1319_v21, %v1047_v18  ;;  %v1322_v8 = vmul.f32 %v1319_v21, %v1046_v45  ;;  %v1324_v30 = vmul.f32 %v1319_v21, %v1048_v49 }
 0x2c2   :  { %v3185_v52 = vmul.f32 %v1319_v21, %v1049_v7 }
 0x2c3   :  { %1099 = vrot.lane.b32.xlu1 %v1049_v7, %s1953_s9 }
 0x2c5   :  { %v3156_v46 = vpop.permute.xlu1 %1260 }
 0x2c7   :  { %1395 = vperm.xlu1 %1913, %v3145_v54  }
 0x321   :  { %v1092_v41 = vpop.permute.xlu1 %1091  ;;  %v1128_v2 = vpop.permute.xlu0 %1127 }
 0x322   :  { %v1111_v42 = vsel %vm1101_vm2, 0.0, %v1092_v41 }
 0x323   :  { %v1122_v33 = vsel %vm1056_vm3, 0.0, %v1111_v42 }
 0x324   :  { %v1168_v6 = vmul.f32 %v3148_v58, %v1122_v33  ;;  %v1240_v38 = vmul.f32 %v3150_v13, %v1122_v33  ;;  %v1312_v44 = vmul.f32 %v3152_v37, %v1122_v33 }
 0x325   :  { %v1094_v40 = vpop.permute.xlu1 %1093  ;;  %v3174_v19 = vpop.permute.xlu0 %1131 }
 0x326   :  { %v1102_v47 = vsel %vm1101_vm2, %v1092_v41, %v1094_v40  ;;  %v1182_v63 = vadd.f32 %v1177_v4, %v1168_v6  ;;  %v1254_v20 = vadd.f32 %v1249_v51, %v1240_v38  ;;  %v1326_v11 = vadd.f32 %v1321_v55, %v1312_v44 }
 0x327   :  { %v1169_v32 = vmul.f32 %v3148_v58, %v1102_v47  ;;  %v1241_v56 = vmul.f32 %v3150_v13, %v1102_v47  ;;  %v1313_v22 = vmul.f32 %v3152_v37, %v1102_v47 }
 0x329   :  { %v1096_v23 = vpop.permute.xlu1 %1095  ;;  %v3183_v43 = vpop.permute.xlu0 %1097  ;;  %v1183_v9 = vadd.f32 %v1178_v57, %v1169_v32  ;;  %v1255_v24 = vadd.f32 %v1250_v62, %v1241_v56  ;;  %v1327_v18 = vadd.f32 %v1322_v8, %v1313_v22 }
 0x32a   :  { %v1103_v29 = vsel %vm1101_vm2, %v1094_v40, %v1096_v23  ;;  %v1104_v17 = vsel %vm1101_vm2, %v1096_v23, %v3183_v43 }
 0x32b   :  { %v1124_v60 = vsel %vm1068_vm4, 0.0, %v1103_v29  ;;  %v1171_v27 = vmul.f32 %v3148_v58, %v1104_v17  ;;  %v1243_v48 = vmul.f32 %v3150_v13, %v1104_v17  ;;  %v1315_v5 = vmul.f32 %v3152_v37, %v1104_v17 }
 0x32c   :  { %v1170_v50 = vmul.f32 %v3148_v58, %v1124_v60  ;;  %v1242_v53 = vmul.f32 %v3150_v13, %v1124_v60  ;;  %v1314_v45 = vmul.f32 %v3152_v37, %v1124_v60 }
 0x32d   :  { %v3198_v49 = vadd.f32 %v1180_v59, %v1171_v27  ;;  %v3200_v7 = vadd.f32 %v1252_v25, %v1243_v48  ;;  %v3202_v12 = vadd.f32 %v1324_v30, %v1315_v5  ;;  %v1130_v0 = vpop.permute.xlu1 %1129  ;;  %v1136_v21 = vpop.permute.xlu0 %1135 }
 0x32e   :  { %v1184_v14 = vadd.f32 %v1179_v28, %v1170_v50  ;;  %v3204_v41 = vadd.f32 %v1251_v10, %v1242_v53  ;;  %v3206_v42 = vadd.f32 %v1323_v1, %v1314_v45  ;;  %v1138_v51 = vsel %vm1137_vm5, %v1128_v2, %v1130_v0 }
 0x32f   :  { %v1139_v33 = vsel %vm1137_vm5, %v1130_v0, %v3174_v19  ;;  %v1191_v62 = vmul.f32 %v3154_v35, %v1138_v51  ;;  %v1263_v4 = vmul.f32 %v3156_v46, %v1138_v51  ;;  %v1335_v25 = vmul.f32 %v3158_v26, %v1138_v51 }
 0x330   :  { %v1192_v6 = vmul.f32 %v3154_v35, %v1139_v33  ;;  %v1264_v10 = vmul.f32 %v3156_v46, %v1139_v33  ;;  %v1336_v28 = vmul.f32 %v3158_v26, %v1139_v33  ;;  %v1148_v38 = vsel %vm1147_vm6, %v1136_v21, 0.0 }
 0x331   :  { %v1196_v2 = vadd.f32 %v1191_v62, %v1182_v63  ;;  %v1268_v57 = vadd.f32 %v1263_v4, %v1254_v20  ;;  %v1340_v40 = vadd.f32 %v1335_v25, %v1326_v11  ;;  %v1163_v44 = vsel %vm1080_vm7, 0.0, %v1148_v38  ;;  %v1134_v23 = vpop.permute.xlu1 %1133 }
 0x332   :  { %v1197_v47 = vadd.f32 %v1192_v6, %v1183_v9  ;;  %v1269_v59 = vadd.f32 %v1264_v10, %v1255_v24  ;;  %v1341_v55 = vadd.f32 %v1336_v28, %v1327_v18  ;;  %v3221_v1 = vmul.f32 %v3154_v35, %v1163_v44 }
 0x333   :  { %v1201_v32 = vsel %vm982_vm0, %v1196_v2, 0.0  ;;  %v1273_v8 = vsel %vm982_vm0, %v1268_v57, 0.0  ;;  %v1345_v56 = vsel %vm982_vm0, %v1340_v40, 0.0  ;;  %v3227_v30 = vmul.f32 %v3156_v46, %v1163_v44 }
 0x334   :  { %v1202_v63 = vrot.slane %v1201_v32, 4  ;;  %v1208_v20 = vsel %vm982_vm0, %v1197_v47, 0.0  ;;  %v1274_v16 = vrot.slane %v1273_v8, 4  ;;  %v1280_v22 = vsel %vm982_vm0, %v1269_v59, 0.0 }
 0x335   :  { %v1209_v11 = vrot.slane %v1208_v20, 4  ;;  %v1281_v9 = vrot.slane %v1280_v22, 4  ;;  %v1346_v29 = vrot.slane %v1345_v56, 4  ;;  %v1352_v17 = vsel %vm982_vm0, %v1341_v55, 0.0 }
 0x336   :  { %v1203_v60 = vadd.f32 %v1202_v63, %v1201_v32  ;;  %v1275_v27 = vadd.f32 %v1274_v16, %v1273_v8  ;;  %v1353_v48 = vrot.slane %v1352_v17, 4  ;;  %v3233_v5 = vmul.f32 %v3158_v26, %v1163_v44 }
 0x337   :  { %v1210_v24 = vadd.f32 %v1209_v11, %v1208_v20  ;;  %v1282_v50 = vadd.f32 %v1281_v9, %v1280_v22  ;;  %v1347_v53 = vadd.f32 %v1346_v29, %v1345_v56  ;;  %v1140_v45 = vsel %vm1137_vm5, %v3174_v19, %v1134_v23 }
 0x338   :  { %v1204_v18 = vrot.slane %v1203_v60, 2  ;;  %v1276_v0 = vrot.slane %v1275_v27, 2  ;;  %v1354_v51 = vadd.f32 %v1353_v48, %v1352_v17  ;;  %v1141_v33 = vsel %vm1137_vm5, %v1134_v23, %v1136_v21 }
 0x339   :  { %v1211_v62 = vrot.slane %v1210_v24, 2  ;;  %v1283_v4 = vrot.slane %v1282_v50, 2  ;;  %v1348_v25 = vrot.slane %v1347_v53, 2  ;;  %v1161_v6 = vsel %vm1063_vm8, 0.0, %v1140_v45 }
 0x33a   :  { %v1205_v10 = vadd.f32 %v1204_v18, %v1203_v60  ;;  %v1277_v28 = vadd.f32 %v1276_v0, %v1275_v27  ;;  %v1355_v38 = vrot.slane %v1354_v51, 2  ;;  %v1193_v2 = vmul.f32 %v3154_v35, %v1161_v6 }
 0x33b   :  { %v1212_v57 = vadd.f32 %v1211_v62, %v1210_v24  ;;  %v1284_v40 = vadd.f32 %v1283_v4, %v1282_v50  ;;  %v1349_v19 = vadd.f32 %v1348_v25, %v1347_v53  ;;  %v1194_v44 = vmul.f32 %v3154_v35, %v1141_v33  ;;  %v1100_v35 = vpop.permute.xlu1 %1099 }
 0x33c   :  { %v1206_v47 = vrot.slane %v1205_v10, 1  ;;  %v1278_v59 = vrot.slane %v1277_v28, 1  ;;  %v1356_v55 = vadd.f32 %v1355_v38, %v1354_v51  ;;  %v1198_v21 = vadd.f32 %v1193_v2, %v1184_v14 }
 0x33d   :  { %v1213_v32 = vrot.slane %v1212_v57, 1  ;;  %v1285_v8 = vrot.slane %v1284_v40, 1  ;;  %v1350_v56 = vrot.slane %v1349_v19, 1  ;;  %v1199_v15 = vadd.f32 %v1194_v44, %v3198_v49 }
 0x33e   :  { %v1207_v63 = vadd.f32 %v1206_v47, %v1205_v10  ;;  %v1279_v20 = vadd.f32 %v1278_v59, %v1277_v28  ;;  %v1357_v16 = vrot.slane %v1356_v55, 1  ;;  %v1215_v22 = vsel %vm982_vm0, %v1198_v21, 0.0 }
 0x33f   :  { %v1214_v23 = vadd.f32 %v1213_v32, %v1212_v57  ;;  %v1286_v11 = vadd.f32 %v1285_v8, %v1284_v40  ;;  %v3244_v9 = vadd.f32 %v1350_v56, %v1349_v19  ;;  %v1216_v29 = vrot.slane %v1215_v22, 4 }
 0x340   :  { %v3246_v17 = vadd.f32 %v1357_v16, %v1356_v55  ;;  %v1222_v14 = vsel %vm982_vm0, %v1199_v15, 0.0  ;;  %v1265_v60 = vmul.f32 %v3156_v46, %v1161_v6  ;;  %v1266_v27 = vmul.f32 %v3156_v46, %v1141_v33 }
 0x341   :  { %v1217_v49 = vadd.f32 %v1216_v29, %v1215_v22  ;;  %v1223_v48 = vrot.slane %v1222_v14, 4  ;;  %v1337_v24 = vmul.f32 %v3158_v26, %v1161_v6  ;;  %v1338_v50 = vmul.f32 %v3158_v26, %v1141_v33 }
 0x342   :  { %v1270_v53 = vadd.f32 %v1265_v60, %v3204_v41  ;;  %v1271_v45 = vadd.f32 %v1266_v27, %v3200_v7  ;;  %v1105_v18 = vsel %vm1101_vm2, %v3183_v43, %v1100_v35  ;;  %v1381_v0 = vsel %vm1380_vm9, %v1207_v63, %v1279_v20 }
 0x343   :  { %v1218_v51 = vrot.slane %v1217_v49, 2  ;;  %v1224_v62 = vadd.f32 %v1223_v48, %v1222_v14  ;;  %v1342_v4 = vadd.f32 %v1337_v24, %v3206_v42  ;;  %v1343_v46 = vadd.f32 %v1338_v50, %v3202_v12 }
 0x344   :  { %v1287_v25 = vsel %vm982_vm0, %v1270_v53, 0.0  ;;  %v1294_v6 = vsel %vm982_vm0, %v1271_v45, 0.0  ;;  %v1172_v26 = vmul.f32 %v3148_v58, %v1105_v18  ;;  %v1244_v41 = vmul.f32 %v3150_v13, %v1105_v18 }
 0x345   :  { %v1219_v7 = vadd.f32 %v1218_v51, %v1217_v49  ;;  %v1225_v33 = vrot.slane %v1224_v62, 2  ;;  %v1288_v43 = vrot.slane %v1287_v25, 4  ;;  %v1295_v10 = vrot.slane %v1294_v6, 4 }
 0x346   :  { %v1359_v28 = vsel %vm982_vm0, %v1342_v4, 0.0  ;;  %v1366_v38 = vsel %vm982_vm0, %v1343_v46, 0.0  ;;  %v1186_v42 = vadd.f32 %v3178_v31, %v1172_v26  ;;  %v1258_v12 = vadd.f32 %v3170_v34, %v1244_v41 }
 0x347   :  { %v1220_v2 = vrot.slane %v1219_v7, 1  ;;  %v1226_v57 = vadd.f32 %v1225_v33, %v1224_v62  ;;  %v1289_v40 = vadd.f32 %v1288_v43, %v1287_v25  ;;  %v1296_v19 = vadd.f32 %v1295_v10, %v1294_v6 }
 0x348   :  { %v1360_v58 = vrot.slane %v1359_v28, 4  ;;  %v1367_v44 = vrot.slane %v1366_v38, 4  ;;  %v1200_v13 = vadd.f32 %v3221_v1, %v1186_v42  ;;  %v1272_v47 = vadd.f32 %v3227_v30, %v1258_v12 }
 0x349   :  { %v1221_v59 = vadd.f32 %v1220_v2, %v1219_v7  ;;  %v1227_v55 = vrot.slane %v1226_v57, 1  ;;  %v1290_v21 = vrot.slane %v1289_v40, 2  ;;  %v1297_v32 = vrot.slane %v1296_v19, 2 }
 0x34a   :  { %v1361_v8 = vadd.f32 %v1360_v58, %v1359_v28  ;;  %v1368_v56 = vadd.f32 %v1367_v44, %v1366_v38  ;;  %v1229_v31 = vsel %vm990_vm1, %v1200_v13, 0.0  ;;  %v1301_v34 = vsel %vm990_vm1, %v1272_v47, 0.0 }
 0x34b   :  { %v1228_v15 = vadd.f32 %v1227_v55, %v1226_v57  ;;  %v1291_v63 = vadd.f32 %v1290_v21, %v1289_v40  ;;  %v1298_v20 = vadd.f32 %v1297_v32, %v1296_v19  ;;  %v1230_v16 = vrot.slane %v1229_v31, 4 }
 0x34c   :  { %v1362_v22 = vrot.slane %v1361_v8, 2  ;;  %v1369_v29 = vrot.slane %v1368_v56, 2  ;;  %v1302_v35 = vrot.slane %v1301_v34, 4  ;;  %v1316_v1 = vmul.f32 %v3152_v37, %v1105_v18  ;;  %v1396_v18 = vpop.permute.xlu1 %1395 }
 0x34d   :  { %v1292_v30 = vrot.slane %v1291_v63, 1  ;;  %v1299_v14 = vrot.slane %v1298_v20, 1  ;;  %v1231_v60 = vadd.f32 %v1230_v16, %v1229_v31  ;;  %v1382_v27 = vsel %vm1380_vm9, %v1214_v23, %v1286_v11 }
 0x34e   :  { %v1363_v49 = vadd.f32 %v1362_v22, %v1361_v8  ;;  %v1370_v48 = vadd.f32 %v1369_v29, %v1368_v56  ;;  %v1303_v24 = vadd.f32 %v1302_v35, %v1301_v34  ;;  %v1330_v50 = vadd.f32 %v3185_v52, %v1316_v1 }
 0x34f   :  { %v1293_v53 = vadd.f32 %v1292_v30, %v1291_v63  ;;  %v1300_v45 = vadd.f32 %v1299_v14, %v1298_v20  ;;  %v1232_v51 = vrot.slane %v1231_v60, 2  ;;  %v1387_v62 = vsel %vm1386_vm10, %v1381_v0, %v3244_v9 }
 0x350   :  { %v1364_v4 = vrot.slane %v1363_v49, 1  ;;  %v1371_v46 = vrot.slane %v1370_v48, 1  ;;  %v1304_v25 = vrot.slane %v1303_v24, 2  ;;  %v1344_v37 = vadd.f32 %v3233_v5, %v1330_v50 }
 0x351   :  { %v1233_v6 = vadd.f32 %v1232_v51, %v1231_v60  ;;  %v1383_v23 = vsel %vm1380_vm9, %v1221_v59, %v1293_v53  ;;  %v1384_v11 = vsel %vm1380_vm9, %v1228_v15, %v1300_v45  ;;  %v1388_v52 = vsel %vm1386_vm10, %v1382_v27, %v3246_v17 }
 0x352   :  { %v1372_v26 = vadd.f32 %v1371_v46, %v1370_v48  ;;  %v1305_v41 = vadd.f32 %v1304_v25, %v1303_v24  ;;  %v1373_v7 = vsel %vm990_vm1, %v1344_v37, 0.0  ;;  %v1365_v33 = vadd.f32 %v1364_v4, %v1363_v49 }
 0x353   :  { %v1234_v9 = vrot.slane %v1233_v6, 1  ;;  %v1374_v0 = vrot.slane %v1373_v7, 4  ;;  %v1398_v43 = vadd.f32 %v1396_v18, %v1387_v62  ;;  %v1399_v10 = vadd.f32 %v1396_v18, %v1388_v52 }
 0x354   :  { %v1306_v28 = vrot.slane %v1305_v41, 1  ;;  %v1389_v5 = vsel %vm1386_vm10, %v1383_v23, %v1365_v33  ;;  %v1390_v38 = vsel %vm1386_vm10, %v1384_v11, %v1372_v26  ;;  %v1965_v46 = vmov 6  }
 0x355   :  { %v1375_v42 = vadd.f32 %v1374_v0, %v1373_v7  ;;  %v1400_v12 = vadd.f32 %v1396_v18, %v1389_v5  ;;  %v1401_v2 = vadd.f32 %v1396_v18, %v1390_v38  ;;  %v3285_v57 = vmax.f32 %v1398_v43, 0.0  ;;  %1914 = vset.pattern.permute.xlu1 %v1965_v46 }
 0x356   :  { %v3287_v17 = vmax.f32 %v1399_v10, 0.0  ;;  %v1235_v40 = vadd.f32 %v1234_v9, %v1233_v6  ;;  %v1307_v44 = vadd.f32 %v1306_v28, %v1305_v41  ;;  %v1966_v41 = vmov 7  }
 0x357   :  { %v1376_v19 = vrot.slane %v1375_v42, 2  ;;  %v1405_v58 = vmax.f32 %v1400_v12, 0.0  ;;  %v1409_v13 = vsel %vm1408_vm11, %v3285_v57, 0.0  ;;  %v1422_v59 = vmul.f32 %v3285_v57, %v3285_v57  ;;  %1915 = vset.pattern.permute.xlu0 %v1966_v41 }
 0x358   :  { %v1410_v47 = vsel %vm1408_vm11, %v3287_v17, 0.0  ;;  %v3295_v21 = vmax.f32 %v1401_v2, 0.0  ;;  %v1423_v8 = vmul.f32 %v3287_v17, %v3287_v17  ;;  %v1385_v63 = vsel %vm1380_vm9, %v1235_v40, %v1307_v44 }
 0x359   :  { %v1377_v55 = vadd.f32 %v1376_v19, %v1375_v42  ;;  %v1412_v32 = vsel %vm1408_vm11, %v1405_v58, 0.0  ;;  %v1424_v56 = vmul.f32 %v1405_v58, %v1405_v58  ;;  %v1427_v31 = vsel %vm1408_vm11, %v1422_v59, 0.0 }
 0x35a   :  { %v1411_v15 = vadd.f32 %v1410_v47, %v1409_v13  ;;  %v1428_v20 = vsel %vm1408_vm11, %v1423_v8, 0.0  ;;  %v1425_v1 = vmul.f32 %v3295_v21, %v3295_v21  ;;  %v1414_v27 = vsel %vm1408_vm11, %v3295_v21, 0.0 }
 0x35b   :  { %v1378_v34 = vrot.slane %v1377_v55, 1  ;;  %v1430_v16 = vsel %vm1408_vm11, %v1424_v56, 0.0  ;;  %v1429_v35 = vadd.f32 %v1428_v20, %v1427_v31  ;;  %vm1803_vm0 = vcmask 91208  }
 0x35c   :  { %v1413_v29 = vadd.f32 %v1412_v32, %v1411_v15  ;;  %v1432_v24 = vsel %vm1408_vm11, %v1425_v1, 0.0  ;;  %vm1814_vm1 = vcmask 17408  }
 0x35d   :  { %v1379_v22 = vadd.f32 %v1378_v34, %v1377_v55  ;;  %v1431_v14 = vadd.f32 %v1430_v16, %v1429_v35 }
 0x35e   :  { %v1415_v49 = vadd.f32 %v1414_v27, %v1413_v29 }
 0x35f   :  { %v1391_v30 = vsel %vm1386_vm10, %v1385_v63, %v1379_v22  ;;  %v1433_v50 = vadd.f32 %v1432_v24, %v1431_v14 }
 0x360   :  { %v1402_v60 = vadd.f32 %v1396_v18, %v1391_v30 }
 0x362   :  { %v1407_v48 = vmax.f32 %v1402_v60, 0.0 }
 0x364   :  { %v1417_v53 = vsel %vm1416_vm12, %v1407_v48, 0.0  ;;  %v1426_v45 = vmul.f32 %v1407_v48, %v1407_v48 }
 0x365   :  { %v1418_v51 = vadd.f32 %v1417_v53, %v1415_v49 }
 0x366   :  { %v1434_v62 = vsel %vm1416_vm12, %v1426_v45, 0.0 }
 0x367   :  { %1419 = vadd.xlane.f32.xlu0 %v1418_v51  ;;  %v1435_v4 = vadd.f32 %v1434_v62, %v1433_v50 }
 0x369   :  { %1436 = vadd.xlane.f32.xlu1 %v1435_v4 }
 0x3f0   :  { %v1420_v25 = vpop.xlane.xlu0 %1419 }
 0x3f1   :  { %v1421_v37 = vmul.f32 0.0016666667, %v1420_v25 }
 0x3f2   :  { %v1437_v18 = vpop.xlane.xlu1 %1436 }
 0x3f3   :  { %v1439_v6 = vmul.f32 %v1421_v37, %v1421_v37  ;;  %v1438_v23 = vmul.f32 0.0016666667, %v1437_v18 }
 0x3f5   :  { %v1440_v11 = vsub.f32 %v1438_v23, %v1439_v6  ;;  %v1541_v6 = vld [vmem:[%s3458_s2 + $0x14] sm:$0x77]  ;;  %v1538_v23 = vld [vmem:[%s3458_s2] sm:$0x77] }
 0x3f7   :  { %v1441_v52 = vmax.f32 %v1440_v11, 0.0 }
 0x3f9   :  { %v1442_v26 = vadd.f32 1e-05, %v1441_v52 }
 0x3fb   :  { %1918 = vrsqrt.f32 %v1442_v26 }
 0x408   :  { %v1919_v7 = vpop.eup %1918 }
 0x409   :  { %v1444_v33 = vmul.f32 %v1919_v7, %v3145_v54  ;;  %v1543_v7 = vld [vmem:[%s3458_s2 + $0x24] sm:$0x7] }
 0x40b   :  { %1453 = vperm.xlu1 %1914, %v1444_v33   ;;  %v1445_v9 = vmul.f32 %v1444_v33, %v1421_v37  ;;  %v1869_v33 = vld [vmem:[%s3458_s2 + $0x50] sm:$0x77] }
 0x40d   :  { %1447 = vrot.lane.b32.xlu0 %v1445_v9, %s1953_s9 }
 0x47f   :  { %v1448_v0 = vpop.permute.xlu0 %1447 }
 0x480   :  { %v1450_v43 = vsub.f32 %v3145_v54, %v1448_v0 }
 0x482   :  { %1463 = vperm.xlu0 %1915, %v1450_v43  }
 0x486   :  { %v1454_v10 = vpop.permute.xlu1 %1453 }
 0x487   :  { %v1458_v28 = vmul.f32 %v1454_v10, %v1405_v58  ;;  %v1456_v5 = vmul.f32 %v1454_v10, %v3285_v57  ;;  %v1460_v2 = vmul.f32 %v1454_v10, %v1407_v48  ;;  %v1457_v40 = vmul.f32 %v1454_v10, %v3287_v17 }
 0x488   :  { %v1459_v54 = vmul.f32 %v1454_v10, %v3295_v21 }
 0x4fd   :  { %v1464_v38 = vpop.permute.xlu0 %1463 }
 0x4fe   :  { %v1468_v42 = vadd.f32 %v1464_v38, %v1458_v28  ;;  %v1466_v12 = vadd.f32 %v1464_v38, %v1456_v5  ;;  %v1470_v19 = vadd.f32 %v1464_v38, %v1460_v2  ;;  %v1467_v44 = vadd.f32 %v1464_v38, %v1457_v40  ;;  %v1540_v28 = vld [vmem:[%s3458_s2 + $0x10] sm:$0x7] }
 0x4ff   :  { %v1469_v58 = vadd.f32 %v1464_v38, %v1459_v54  ;;  %v1542_v38 = vld [vmem:[%s3458_s2 + $0x1c] sm:$0x77] }
 0x500   :  { %1480 = vrot.lane.b32.xlu0 %v1468_v42, %s1964_s10  ;;  %1476 = vrot.lane.b32.xlu1 %v1466_v12, %s1964_s10  ;;  %v1870_v54 = vld [vmem:[%s3458_s2 + $0x58] sm:$0x77] }
 0x504   :  { %1484 = vrot.lane.b32.xlu0 %v1470_v19, %s1964_s10  ;;  %1478 = vrot.lane.b32.xlu1 %v1467_v44, %s1964_s10 }
 0x508   :  { %1482 = vrot.lane.b32.xlu1 %v1469_v58, %s1964_s10 }
 0x572   :  { %v1477_v57 = vpop.permute.xlu1 %1476  ;;  %v1481_v13 = vpop.permute.xlu0 %1480 }
 0x576   :  { %v1479_v47 = vpop.permute.xlu1 %1478  ;;  %v1485_v8 = vpop.permute.xlu0 %1484 }
 0x577   :  { %v1486_v59 = vsel %vm1137_vm5, %v1477_v57, %v1479_v47  ;;  %v1487_v55 = vsel %vm1137_vm5, %v1479_v47, %v1481_v13  ;;  %v1495_v63 = vsel %vm1147_vm6, %v1485_v8, 0.0 }
 0x578   :  { %v1496_v32 = vmax.f32 %v1466_v12, %v1486_v59  ;;  %v1497_v17 = vmax.f32 %v1467_v44, %v1487_v55  ;;  %v1500_v20 = vmax.f32 %v1470_v19, %v1495_v63  ;;  %v1539_v12 = vld [vmem:[%s3458_s2 + $0x8] sm:$0x77] }
 0x57a   :  { %1508 = vrot.lane.b32.xlu0 %v1497_v17, %s1967_s13  ;;  %1506 = vrot.lane.b32.xlu1 %v1496_v32, %s1967_s13  ;;  %v1483_v56 = vpop.permute.xlu1 %1482 }
 0x57b   :  { %v1488_v31 = vsel %vm1137_vm5, %v1481_v13, %v1483_v56  ;;  %v1489_v21 = vsel %vm1137_vm5, %v1483_v56, %v1485_v8 }
 0x57c   :  { %v1498_v34 = vmax.f32 %v1468_v42, %v1488_v31  ;;  %v1499_v15 = vmax.f32 %v1469_v58, %v1489_v21 }
 0x57e   :  { %1512 = vrot.lane.b32.xlu0 %v1499_v15, %s1967_s13  ;;  %1510 = vrot.lane.b32.xlu1 %v1498_v34, %s1967_s13 }
 0x582   :  { %1514 = vrot.lane.b32.xlu1 %v1500_v20, %s1967_s13 }
 0x5ec   :  { %v1509_v16 = vpop.permute.xlu0 %1508  ;;  %v1507_v22 = vpop.permute.xlu1 %1506 }
 0x5ed   :  { %v1517_v29 = vsel %vm1516_vm13, %v1507_v22, %v1509_v16 }
 0x5ee   :  { %v1528_v35 = vmax.f32 %v1496_v32, %v1517_v29 }
 0x5f0   :  { %v1513_v1 = vpop.permute.xlu0 %1512  ;;  %v1511_v30 = vpop.permute.xlu1 %1510  ;;  %v1547_v48 = vrot.slane %v1528_v35, %v3598_v39  ;;  %v1725_v24 = vrot.slane %v1528_v35, %v3602_v3  ;;  %v1637_v46 = vrot.slane %v1528_v35, %v3600_v36  ;;  %v1871_v35 = vld [vmem:[%s3458_s2 + $0x60] sm:$0x7] }
 0x5f1   :  { %v1518_v14 = vsel %vm1516_vm13, %v1509_v16, %v1511_v30  ;;  %v1519_v60 = vsel %vm1516_vm13, %v1511_v30, %v1513_v1  ;;  %v1863_v30 = vld [vmem:[%s3458_s2 + $0x28] sm:$0x77] }
 0x5f2   :  { %v1529_v27 = vmax.f32 %v1497_v17, %v1518_v14  ;;  %v1530_v49 = vmax.f32 %v1498_v34, %v1519_v60 }
 0x5f4   :  { %v1551_v50 = vrot.slane %v1529_v27, %v3598_v39  ;;  %v1515_v53 = vpop.permute.xlu1 %1514  ;;  %v1641_v45 = vrot.slane %v1529_v27, %v3600_v36  ;;  %v1729_v51 = vrot.slane %v1529_v27, %v3602_v3  ;;  %v1555_v11 = vrot.slane %v1530_v49, %v3598_v39 }
 0x5f5   :  { %v1520_v62 = vsel %vm1516_vm13, %v1513_v1, %v1515_v53  ;;  %v1527_v4 = vsel %vm1526_vm14, %v1515_v53, 0.0  ;;  %v1645_v52 = vrot.slane %v1530_v49, %v3600_v36  ;;  %v1733_v26 = vrot.slane %v1530_v49, %v3602_v3 }
 0x5f6   :  { %v1568_v25 = vcombine.low %v1547_v48, %v1551_v50  ;;  %v1531_v37 = vmax.f32 %v1499_v15, %v1520_v62  ;;  %v3338_v18 = vmax.f32 %v1500_v20, %v1527_v4  ;;  %v3349_v41 = vcombine.low %v1725_v24, %v1729_v51  ;;  %v1864_v48 = vld [vmem:[%s3458_s2 + $0x30] sm:$0x77]  ;;  %v1866_v24 = vld [vmem:[%s3458_s2 + $0x3c] sm:$0x77]  ;;  %v1867_v62 = vld [vmem:[%s3458_s2 + $0x44] sm:$0x77] }
 0x5f7   :  { %v1658_v5 = vcombine.low %v1637_v46, %v1641_v45 }
 0x5f8   :  { %v1559_v9 = vrot.slane %v1531_v37, %v3598_v39  ;;  %v1649_v0 = vrot.slane %v1531_v37, %v3600_v36  ;;  %v1737_v43 = vrot.slane %v1531_v37, %v3602_v3  ;;  %v1563_v10 = vrot.slane %v3338_v18, %v3598_v39 }
 0x5f9   :  { %v1575_v42 = vmul.f32 %v1568_v25, %v1541_v6  ;;  %v1572_v2 = vmul.f32 %v1568_v25, %v1538_v23  ;;  %v3373_v40 = vrot.slane %v3338_v18, %v3602_v3  ;;  %v1750_v58 = vmul.f32 %v1869_v33, %v3349_v41  ;;  %v1865_v23 = vld [vmem:[%s3458_s2 + $0x38] sm:$0x7] }
 0x5fa   :  { %v1569_v39 = vcombine.low %v1555_v11, %v1559_v9  ;;  %v3375_v19 = vcombine.low %v1733_v26, %v1737_v43  ;;  %v1577_v44 = vmul.f32 %v1563_v10, %v1543_v7  ;;  %v1659_v57 = vcombine.low %v1645_v52, %v1649_v0 }
 0x5fb   :  { %v1584_v13 = vcombine.high %v1575_v42, %v1575_v42  ;;  %v1574_v47 = vmul.f32 %v1563_v10, %v1540_v28  ;;  %v1582_v59 = vcombine.high %v1572_v2, %v1572_v2  ;;  %v1601_v32 = vsel %vm1408_vm11, %v1575_v42, 0.0 }
 0x5fc   :  { %v1576_v55 = vmul.f32 %v1569_v39, %v1542_v38  ;;  %v1608_v3 = vsel %vm1416_vm12, %v1577_v44, 0.0  ;;  %v1573_v17 = vmul.f32 %v1569_v39, %v1539_v12  ;;  %v1590_v56 = vsel %vm1408_vm11, %v1572_v2, 0.0  ;;  %v1872_v2 = vld [vmem:[%s3458_s2 + $0x64] sm:$0x77]  ;;  %v1873_v44 = vld [vmem:[%s3458_s2 + $0x6c] sm:$0x77] }
 0x5fd   :  { %v1602_v8 = vsel %vm1408_vm11, %v1584_v13, 0.0  ;;  %v1591_v31 = vsel %vm1408_vm11, %v1582_v59, 0.0  ;;  %v1751_v21 = vmul.f32 %v1870_v54, %v3375_v19  ;;  %v1597_v29 = vsel %vm1416_vm12, %v1574_v47, 0.0  ;;  %v1868_v47 = vld [vmem:[%s3458_s2 + $0x4c] sm:$0x7] }
 0x5fe   :  { %v1585_v34 = vcombine.high %v1576_v55, %v1576_v55  ;;  %v1603_v15 = vadd.f32 %v1602_v8, %v1601_v32  ;;  %v1604_v63 = vsel %vm1408_vm11, %v1576_v55, 0.0  ;;  %v1583_v20 = vcombine.high %v1573_v17, %v1573_v17 }
 0x5ff   :  { %v1592_v16 = vadd.f32 %v1591_v31, %v1590_v56  ;;  %v1593_v22 = vsel %vm1408_vm11, %v1573_v17, 0.0  ;;  %v1760_v1 = vcombine.high %v1750_v58, %v1750_v58  ;;  %v1761_v49 = vcombine.high %v1751_v21, %v1751_v21 }
 0x600   :  { %v1605_v14 = vadd.f32 %v1604_v63, %v1603_v15  ;;  %v1606_v60 = vsel %vm1408_vm11, %v1585_v34, 0.0  ;;  %v1595_v27 = vsel %vm1408_vm11, %v1583_v20, 0.0  ;;  %v1768_v53 = vsel %vm1408_vm11, %v1750_v58, 0.0 }
 0x601   :  { %v1594_v50 = vadd.f32 %v1593_v22, %v1592_v16  ;;  %v1769_v45 = vsel %vm1408_vm11, %v1760_v1, 0.0  ;;  %v1771_v51 = vsel %vm1408_vm11, %v1751_v21, 0.0  ;;  %v1752_v46 = vmul.f32 %v1871_v35, %v3373_v40 }
 0x602   :  { %v1607_v4 = vadd.f32 %v1606_v60, %v1605_v14  ;;  %v1770_v25 = vadd.f32 %v1769_v45, %v1768_v53  ;;  %v1773_v37 = vsel %vm1408_vm11, %v1761_v49, 0.0  ;;  %v1653_v11 = vrot.slane %v3338_v18, %v3600_v36 }
 0x603   :  { %v1596_v6 = vadd.f32 %v1595_v27, %v1594_v50  ;;  %v1662_v52 = vmul.f32 %v1863_v30, %v1658_v5  ;;  %v1663_v26 = vmul.f32 %v1864_v48, %v1659_v57  ;;  %v1665_v9 = vmul.f32 %v1866_v24, %v1658_v5 }
 0x604   :  { %v1609_v7 = vadd.f32 %v1608_v3, %v1607_v4  ;;  %v1772_v33 = vadd.f32 %v1771_v51, %v1770_v25  ;;  %v1666_v0 = vmul.f32 %v1867_v62, %v1659_v57  ;;  %v1775_v42 = vsel %vm1416_vm12, %v1752_v46, 0.0  ;;  %v3646_v62 = vld [vmem:[#allocation5_spill] sm:$0xff] }
 0x605   :  { %v1598_v43 = vadd.f32 %v1597_v29, %v1596_v6  ;;  %v1672_v10 = vcombine.high %v1662_v52, %v1662_v52  ;;  %v1673_v28 = vcombine.high %v1663_v26, %v1663_v26  ;;  %v1664_v12 = vmul.f32 %v1865_v23, %v1653_v11 }
 0x606   :  { %1610 = vadd.xlane.f32.xlu1 %v1609_v7  ;;  %v1774_v38 = vadd.f32 %v1773_v37, %v1772_v33  ;;  %v1680_v36 = vsel %vm1408_vm11, %v1662_v52, 0.0  ;;  %v1683_v5 = vsel %vm1408_vm11, %v1663_v26, 0.0  ;;  %v1674_v39 = vcombine.high %v1665_v9, %v1665_v9 }
 0x607   :  { %1599 = vadd.xlane.f32.xlu0 %v1598_v43  ;;  %v1681_v18 = vsel %vm1408_vm11, %v1672_v10, 0.0  ;;  %v1685_v57 = vsel %vm1408_vm11, %v1673_v28, 0.0  ;;  %v1675_v13 = vcombine.high %v1666_v0, %v1666_v0  ;;  %v1691_v59 = vsel %vm1408_vm11, %v1665_v9, 0.0 }
 0x608   :  { %v1776_v54 = vadd.f32 %v1775_v42, %v1774_v38  ;;  %v1682_v58 = vadd.f32 %v1681_v18, %v1680_v36  ;;  %v1692_v55 = vsel %vm1408_vm11, %v1674_v39, 0.0  ;;  %v1694_v32 = vsel %vm1408_vm11, %v1666_v0, 0.0 }
 0x609   :  { %v1753_v3 = vmul.f32 %v1872_v2, %v3349_v41  ;;  %v1693_v8 = vadd.f32 %v1692_v55, %v1691_v59  ;;  %v1754_v56 = vmul.f32 %v1873_v44, %v3375_v19  ;;  %v1696_v31 = vsel %vm1408_vm11, %v1675_v13, 0.0  ;;  %v1874_v19 = vld [vmem:[%s3458_s2 + $0x74] sm:$0x7] }
 0x60a   :  { %1777 = vadd.xlane.f32.xlu1 %v1776_v54  ;;  %v1684_v17 = vadd.f32 %v1683_v5, %v1682_v58  ;;  %v1667_v15 = vmul.f32 %v1868_v47, %v1653_v11  ;;  %v1687_v16 = vsel %vm1416_vm12, %v1664_v12, 0.0  ;;  %v1755_v49 = vmul.f32 %v1874_v19, %v3373_v40  ;;  %v1862_v40 = vld [vmem:[%s3457_s1] ss:$0 sm:$0xff]  ;;  %s1968_s1 = smov 119  }
 0x60b   :  { %v1762_v21 = vcombine.high %v1753_v3, %v1753_v3  ;;  %v1695_v63 = vadd.f32 %v1694_v32, %v1693_v8  ;;  %v1763_v20 = vcombine.high %v1754_v56, %v1754_v56  ;;  %v1779_v22 = vsel %vm1408_vm11, %v1753_v3, 0.0 }
 0x60c   :  { %v1686_v34 = vadd.f32 %v1685_v57, %v1684_v17  ;;  %v1782_v41 = vsel %vm1408_vm11, %v1754_v56, 0.0  ;;  %v1698_v27 = vsel %vm1416_vm12, %v1667_v15, 0.0  ;;  %v1786_v50 = vsel %vm1416_vm12, %v1755_v49, 0.0 }
 0x60d   :  { %v1780_v29 = vsel %vm1408_vm11, %v1762_v21, 0.0  ;;  %v1697_v1 = vadd.f32 %v1696_v31, %v1695_v63  ;;  %v1784_v14 = vsel %vm1408_vm11, %v1763_v20, 0.0  ;;  %v1614_v45 = vadd.s32 4294967287, %v3161_v61 }
 0x60e   :  { %v1688_v35 = vadd.f32 %v1687_v16, %v1686_v34  ;;  %v1781_v30 = vadd.f32 %v1780_v29, %v1779_v22 }
 0x60f   :  { %v1699_v48 = vadd.f32 %v1698_v27, %v1697_v1  ;;  %v1617_v4 = vsub.s32 %v1614_v45, %v3646_v62 }
 0x610   :  { %1689 = vadd.xlane.f32.xlu0 %v1688_v35  ;;  %v1783_v60 = vadd.f32 %v1782_v41, %v1781_v30 }
 0x612   :  { %v1785_v24 = vadd.f32 %v1784_v14, %v1783_v60 }
 0x614   :  { %1700 = vadd.xlane.f32.xlu0 %v1699_v48  ;;  %v1787_v53 = vadd.f32 %v1786_v50, %v1785_v24 }
 0x618   :  { %1788 = vadd.xlane.f32.xlu0 %v1787_v53 }
 0x68f   :  { %v1611_v46 = vpop.xlane.xlu1 %1610 }
 0x690   :  { %v1600_v51 = vpop.xlane.xlu0 %1599  ;;  %v1622_v37 = vrot.slane %v1611_v46, %v1617_v4 }
 0x691   :  { %v1618_v6 = vrot.slane %v1600_v51, %v1617_v4 }
 0x693   :  { %v1624_v11 = vsel %vm1623_vm15, %v1622_v37, %v1618_v6  ;;  %v1778_v7 = vpop.xlane.xlu1 %1777 }
 0x694   :  { %v1626_v9 = vadd.f32 %v1862_v40, %v1624_v11  ;;  %v1795_v0 = vrot.slane %v1778_v7, %v1617_v4 }
 0x699   :  { %v1690_v25 = vpop.xlane.xlu0 %1689 }
 0x69a   :  { %v1707_v52 = vrot.slane %v1690_v25, %v1617_v4 }
 0x69d   :  { %v1701_v23 = vpop.xlane.xlu0 %1700 }
 0x69e   :  { %v1711_v26 = vrot.slane %v1701_v23, %v1617_v4 }
 0x6a0   :  { %v1712_v33 = vsel %vm1623_vm15, %v1711_v26, %v1707_v52 }
 0x6a1   :  { %v1789_v61 = vpop.xlane.xlu0 %1788  ;;  %v1714_v10 = vadd.f32 %v1712_v33, %v1626_v9 }
 0x6a2   :  { %v1799_v43 = vrot.slane %v1789_v61, %v1617_v4 }
 0x6a4   :  { %v1800_v28 = vsel %vm1623_vm15, %v1799_v43, %v1795_v0 }
 0x6a5   :  { %v1802_v38 = vadd.f32 %v1800_v28, %v1714_v10 }
 0x6a7   :  { %v1804_v42 = vsel %vm1803_vm0, %v1802_v38, -inf }
 0x6a8   :  { %1805 = vmax.xlane.f32.xlu1 %v1804_v42 }
 0x731   :  { %v1806_v12 = vpop.xlane.xlu1 %1805 }
 0x732   :  { %v1807_v2 = vsub.f32 %v1802_v38, %v1806_v12 }
 0x734   :  { %v1808_v36 = vmul.f32 1.442695, %v1807_v2 }
 0x736   :  { %1920 = vpow2.f32 %v1808_v36 }
 0x743   :  { %v1921_v18 = vpop.eup %1920 }
 0x744   :  { %1811 = vrot.lane.b32.xlu0 %v1921_v18, %s1968_s1 }
 0x7b6   :  { %v1812_v5 = vpop.permute.xlu0 %1811 }
 0x7b7   :  { %v1815_v39 = vsel %vm1814_vm1, %v1812_v5, 0.0 }
 0x7b8   :  { %1816 = vadd.xlane.f32.xlu1 %v1815_v39 }
 0x841   :  { %v1817_v44 = vpop.xlane.xlu1 %1816 }
 0x842   :  { %1922 = vlog2.f32 %v1817_v44 }
 0x84f   :  { %v1923_v54 = vpop.eup %1922 }
 0x850   :  { %v1819_v58 = vmul.f32 0.6931472, %v1923_v54 }
 0x852   :  { %v1820_v57 = vsub.f32 %v1807_v2, %v1819_v58 }
 0x854   :  { %1822 = vrot.lane.b32.xlu1 %v1820_v57, %s1968_s1 }
 0x8c6   :  { %v1823_v13 = vpop.permute.xlu1 %1822 }
 0x8c7   :  { %1825 = vst.msk [vmem:[#allocation2] sm:$0x3] %vm1814_vm1, %v1823_v13 }
 0x8c8   :  { %1936 = shalt.err (!%p1933_p4)
}
 0x8c9   :  { %1835 = dma.vmem_to_hbm [thread:$0]  %s1833_s24, 32, %s3459_s3, [#allocation3]  }
 0x8ca   :  { %1945 = dma.done.wait [#allocation3], 32  }
 0x8cb   :  { %1946 = vsyncadd [#allocation3], 4294967264 }
 0x8cc   :  { %1839 = vsyncpa [#allocation3], 1 }

</bundles_post_ra>
